<compile_context>
chip_gen: v5e
topology: v5e:2x2
jax: 0.10.0
libtpu: 0.0.40
codegen_flags: <defaults>
</compile_context>

<pallas_src>
import functools

import jax
import jax.numpy as jnp
from jax.experimental import pallas as pl
from jax.experimental.pallas import tpu as pltpu


def _round_up(x, m):
    return ((x + m - 1) // m) * m


def _pick_batch_block(bs, n_node, n_head, target_rows=512,
                      adj_budget_bytes=4 * 1024 * 1024):
    """Batch elements per grid step.

    Fill the MXU M dim (target_rows), keep (8,128) tiling legal, keep the
    per-step block-diagonal adjacency under a VMEM budget, and leave >=2 grid
    steps so the v7x megacore "parallel" axis has work (no-op on v5e/v6e).
    """
    if n_node % 8 != 0:
        # Only a full-array block keeps the (8,128) sublane constraint legal.
        return bs
    bb = max(1, min(bs, max(1, target_rows // n_node)))
    if bs >= 2:
        bb = min(bb, bs // 2)          # >=2 grid steps for the v7x megacore
    bb = max(bb, 1)
    while bs % bb != 0:
        bb -= 1
    # Cap so the per-step block-diag adjacency stays small in VMEM.
    while bb > 1 and n_head * (bb * n_node) ** 2 * 4 > adj_budget_bytes:
        bb -= 1
        while bs % bb != 0:
            bb -= 1
    return bb


def _const_weight_spec(block_shape, index_map):
    """Grid-invariant weight input: its block index never changes, so a single
    pipeline buffer suffices (halves its VMEM footprint; matters on v7x)."""
    try:
        return pl.BlockSpec(block_shape, index_map,
                            pipeline_mode=pl.Buffered(1))
    except TypeError:   # graceful fallback if BlockSpec lacks pipeline_mode
        return pl.BlockSpec(block_shape, index_map)


def _mhgrn_kernel(xp_ref, abd_ref, start_ref, end_ref, trans_ref,
                  w0_ref, waug_ref, wpad_ref, out_ref,
                  *, k, n_head, h, hp, out_p, eps, mm_dtype):
    """One block of bb batch elements per grid step; all k hops."""
    f32 = jnp.float32
    mm = mm_dtype
    rows = xp_ref.shape[0]

    start = start_ref[...].astype(f32)                 # (rows, 1)
    end = end_ref[...].astype(f32)                     # (rows, 1)
    # Xp = [X | 1 | 0] built in the wrapper -> F0 = [X*start | start | 0]
    # with a single VPU multiply (no in-kernel lane concat).
    F0 = xp_ref[...].astype(f32) * start               # (rows, Hp)
    T = trans_ref[...].astype(f32)                     # (rows, n_head^2)
    # uni_attn is pre-folded into the block-diag adjacency in the wrapper;
    # load + cast once per grid step (hoisted out of the hop loop).
    A_bd = abd_ref[...].astype(mm)[0]                  # (n_head, rows, rows)

    O = jnp.zeros((rows, out_p), f32)                  # packed hop outputs

    # TODO(synk): for real MHGRN head counts (~34) move this Python-list head
    # carry into a pltpu.VMEM((n_head, rows, Hp)) scratch + lax.fori_loop and
    # stream the per-hop weights from HBM (pl.ANY + pltpu.make_async_copy) so
    # live ranges / weight residency fit v7x's 64 MiB VMEM.
    F = [None] * n_head
    for t in range(k):
        # ---- head mixing + per-head augmented-W matmul ----------------------
        if t == 0:
            # All heads share F0: one wide MXU call, heads tiled along lanes.
            G = jnp.dot(F0.astype(mm), w0_ref[...].astype(mm),
                        preferred_element_type=f32)    # (rows, n_head*Hp)
            M = [G[:, a * hp:(a + 1) * hp] for a in range(n_head)]
        else:
            M = []
            for j in range(n_head):
                # mixed_j = sum_i F_i * trans[:, i, j] as whole-(rows,Hp) ops.
                mixed = F[0] * T[:, j:j + 1]
                for i in range(1, n_head):
                    c = i * n_head + j
                    mixed = mixed + F[i] * T[:, c:c + 1]
                M.append(jnp.dot(mixed.astype(mm),
                                 waug_ref[t - 1, j].astype(mm),
                                 preferred_element_type=f32))

        # ---- adjacency propagation: one fat block-diag matmul per head ------
        # (uni_attn already folded into A_bd; degree column rides along.)
        F = [jnp.dot(A_bd[a], M[a].astype(mm), preferred_element_type=f32)
             for a in range(n_head)]

        # ---- aggregate heads, W_pad (placed at hop-t lanes), normalize ------
        S = F[0]
        for a in range(1, n_head):
            S = S + F[a]                               # (rows, Hp)
        Zw = jnp.dot(S.astype(mm), wpad_ref[t].astype(mm),
                     preferred_element_type=f32)       # (rows, OutP); only
                                                       # lanes t*h:(t+1)*h != 0
        d = S[:, h:h + 1] * end + eps                  # (rows, 1) degree
        inv = pl.reciprocal(d, approx=True)            # EUP vrcp
        inv = inv * (2.0 - d * inv)                    # one Newton refinement
        O = O + Zw * (end * inv)                       # disjoint lanes per hop

    out_ref[...] = O.astype(out_ref.dtype)             # one unmasked store


def multihop_message_passing(X, A, start_attn, end_attn, uni_attn, trans_attn,
                             W, W_pad, *, k, n_head, eps=1e-20,
                             matmul_dtype=jnp.float32):
    f32 = jnp.float32
    bs, n_node, h = X.shape
    hp = _round_up(h + 1, 128)
    out_p = _round_up(k * h, 128)
    bb = _pick_batch_block(bs, n_node, n_head)
    n_blocks = bs // bb
    rows = bb * n_node

    # ---- weights (wrapper-side layout plumbing, plain XLA) ------------------
    # Lane-augmented per-head weights: block-diag(W[t,a], 1), zero-padded to
    # Hp lanes, so the degree column flows through the same matmuls.
    W_aug = jnp.zeros((k, n_head, hp, hp), f32)
    W_aug = W_aug.at[:, :, :h, :h].set(W.astype(f32))
    W_aug = W_aug.at[:, :, h, h].set(1.0)
    # Hop-0 fused weight: heads concatenated along lanes -> (Hp, n_head*Hp).
    W0_cat = jnp.transpose(W_aug[0], (1, 0, 2)).reshape(hp, n_head * hp)
    # Only hops 1..k-1 need per-head weights inside the kernel.
    if k > 1:
        W_aug_rest = W_aug[1:]
    else:
        W_aug_rest = jnp.zeros((1, n_head, hp, hp), f32)   # never read
    # W_pad[t] placed into output lanes [t*h, (t+1)*h): the k hop results pack
    # into one lane-dense (rows, OutP) tile -> single unmasked store.
    W_pad_placed = jnp.zeros((k, hp, out_p), f32)
    for t in range(k):
        W_pad_placed = W_pad_placed.at[t, :h, t * h:(t + 1) * h].set(
            W_pad[t].astype(f32))

    # ---- activations / attention (wrapper-side layout plumbing) -------------
    pad_cols = hp - (h + 1)
    parts = [X.reshape(bs * n_node, h).astype(f32),
             jnp.ones((bs * n_node, 1), f32)]
    if pad_cols:
        parts.append(jnp.zeros((bs * n_node, pad_cols), f32))
    Xp = jnp.concatenate(parts, axis=1)                    # [X | 1 | 0]
    start2 = start_attn.reshape(bs * n_node, 1).astype(f32)
    end2 = end_attn.reshape(bs * n_node, 1).astype(f32)
    # trans coefficients broadcast per node: row b*n_node+i holds
    # trans_attn[b].reshape(-1)  (column index = i_src*n_head + j_dst).
    trans_cols = jnp.broadcast_to(
        trans_attn.reshape(bs, 1, n_head * n_head).astype(f32),
        (bs, n_node, n_head * n_head)).reshape(bs * n_node, n_head * n_head)
    # uni_attn folded into the adjacency ((uni*A)@M == A@(uni*M)); the bb
    # adjacencies of each grid step are packed into one block-diagonal
    # (rows, rows) matrix per head -> one fat MXU matmul instead of bb tiny ones.
    A_sc = (A * uni_attn[:, :, None, None]).astype(f32)
    A_sc = A_sc.reshape(n_blocks, bb, n_head, n_node, n_node)
    A_bd = jnp.einsum('gbaij,bc->gabicj', A_sc, jnp.eye(bb, dtype=f32))
    A_bd = A_bd.reshape(n_blocks, n_head, rows, rows)

    # MXU-operand dtype (f32 = reference semantics; bf16 = fast path with f32
    # accumulation).  Casting here also halves weight/adjacency DMA for bf16.
    mmd = matmul_dtype
    W0_cat = W0_cat.astype(mmd)
    W_aug_rest = W_aug_rest.astype(mmd)
    W_pad_placed = W_pad_placed.astype(mmd)
    A_bd = A_bd.astype(mmd)

    kernel = functools.partial(
        _mhgrn_kernel, k=k, n_head=n_head, h=h, hp=hp, out_p=out_p, eps=eps,
        mm_dtype=matmul_dtype)

    grid_spec = pltpu.PrefetchScalarGridSpec(
        num_scalar_prefetch=0,
        grid=(n_blocks,),
        in_specs=[
            pl.BlockSpec((rows, hp), lambda b: (b, 0)),                  # Xp
            pl.BlockSpec((1, n_head, rows, rows),
                         lambda b: (b, 0, 0, 0)),                        # A_bd
            pl.BlockSpec((rows, 1), lambda b: (b, 0)),                   # start
            pl.BlockSpec((rows, 1), lambda b: (b, 0)),                   # end
            pl.BlockSpec((rows, n_head * n_head), lambda b: (b, 0)),     # trans
            _const_weight_spec((hp, n_head * hp), lambda b: (0, 0)),     # W0_cat
            _const_weight_spec((max(k - 1, 1), n_head, hp, hp),
                               lambda b: (0, 0, 0, 0)),                  # W_aug
            _const_weight_spec((k, hp, out_p), lambda b: (0, 0, 0)),     # W_pad
        ],
        out_specs=pl.BlockSpec((rows, out_p), lambda b: (b, 0)),
    )

    out = pl.pallas_call(
        kernel,
        grid_spec=grid_spec,
        out_shape=jax.ShapeDtypeStruct((bs * n_node, out_p), X.dtype),
        compiler_params=pltpu.CompilerParams(
            dimension_semantics=("parallel",),      # batch blocks independent
            vmem_limit_bytes=64 * 1024 * 1024),
    )(Xp, A_bd, start2, end2, trans_cols, W0_cat, W_aug_rest, W_pad_placed)

    out = out.reshape(bs, n_node, out_p)
    return [out[:, :, t * h:(t + 1) * h] for t in range(k)]


# ----------------------------- glue / setup ---------------------------------

def get_weights(w_vs, k, h):
    """Mirrors MultiHopMessagePassingLayer._get_weights for n_basis=0."""
    W = w_vs[:, :-1]            # (k, n_head, H, H)
    Wi = w_vs[:, -1]            # (k, H, H)
    pads = [jnp.eye(h, dtype=w_vs.dtype)]
    for t in range(k - 1):
        pads = [Wi[k - 1 - t] @ pads[0]] + pads
    return W, jnp.stack(pads)   # (k, n_head, H, H), (k, H, H)


def reference_forward(X, A, start_attn, end_attn, uni_attn, trans_attn,
                      W, W_pad, k, n_head, eps):
    """Pure-JAX transcription of the PyTorch forward (for verification)."""
    bs, n_node, h = X.shape
    Z_all = []
    Z = X * start_attn[:, :, None]
    for t in range(k):
        if t == 0:
            Z = jnp.broadcast_to(Z[..., None], (bs, n_node, h, n_head))
        else:
            Z = jnp.transpose(Z, (0, 2, 3, 1))
            Z = jnp.einsum('bnhi,bij->bnhj', Z, trans_attn)
        Z = jnp.einsum('bnha,ahd->band', Z, W[t])
        Z = Z * uni_attn[:, :, None, None]
        Z = jnp.einsum('bamn,band->bamd', A, Z)
        Zt = jnp.matmul(Z.sum(1), W_pad[t]) * end_attn[:, :, None]
        Z_all.append(Zt)
    D_all = []
    D = start_attn
    for t in range(k):
        if t == 0:
            D = jnp.broadcast_to(D[:, None, :], (bs, n_head, n_node))
        else:
            D = jnp.einsum('bin,bij->bjn', D, trans_attn)
        D = D * uni_attn[:, :, None]
        D = jnp.einsum('bamn,ban->bam', A, D)
        Dt = D.sum(1) * end_attn
        D_all.append(Dt)
    return [Zt / (Dt[:, :, None] + eps) for Zt, Dt in zip(Z_all, D_all)]


# TODO(synk): `decode()` (per-sample path back-tracking with data-dependent
# Python control flow / argmax back-pointers) is inference-time glue, not part
# of forward; not ported to Pallas.

if __name__ == "__main__":
    k, n_head, hidden = 2, 4, 32
    bs, n_node = 2, 8
    eps = 1e-20
    init_range = 0.01

    key = jax.random.PRNGKey(0)
    ks = jax.random.split(key, 7)

    # Parameter init (deterministic, matches nn.Parameter shapes for n_basis=0).
    w_vs = jax.random.uniform(ks[0], (k, n_head + 1, hidden, hidden),
                              minval=-init_range, maxval=init_range,
                              dtype=jnp.float32)

    X = jax.random.normal(ks[1], (bs, n_node, hidden), dtype=jnp.float32)
    A = (jax.random.uniform(ks[2], (bs, n_head, n_node, n_node)) > 0.5
         ).astype(jnp.float32)
    start_attn = jax.random.uniform(ks[3], (bs, n_node), dtype=jnp.float32)
    end_attn = jax.random.uniform(ks[4], (bs, n_node), dtype=jnp.float32)
    uni_attn = jax.random.uniform(ks[5], (bs, n_head), dtype=jnp.float32)
    trans_attn = jax.random.uniform(ks[6], (bs, n_head, n_head),
                                    dtype=jnp.float32)

    W, W_pad = get_weights(w_vs, k, hidden)
    ref = reference_forward(X, A, start_attn, end_attn, uni_attn, trans_attn,
                            W, W_pad, k, n_head, eps)

    # f32 MXU path: matches the PyTorch float32 semantics (strict tolerance).
    out = multihop_message_passing(X, A, start_attn, end_attn, uni_attn,
                                   trans_attn, W, W_pad, k=k, n_head=n_head,
                                   eps=eps, matmul_dtype=jnp.float32)
    out = [jax.block_until_ready(z) for z in out]
    for z_k, r_k in zip(out, ref):
        assert z_k.shape == (bs, n_node, hidden)
        if not jnp.allclose(z_k, r_k, rtol=1e-3, atol=1e-5):
            raise AssertionError("Pallas kernel (f32) result mismatch vs reference")

    # bf16 MXU operands with f32 accumulation (perf-review fast path),
    # validated at a tolerance appropriate for bf16 rounding.
    out_bf = multihop_message_passing(X, A, start_attn, end_attn, uni_attn,
                                      trans_attn, W, W_pad, k=k, n_head=n_head,
                                      eps=eps, matmul_dtype=jnp.bfloat16)
    out_bf = [jax.block_until_ready(z) for z in out_bf]
    for z_k, r_k in zip(out_bf, ref):
        if not jnp.allclose(z_k, r_k, rtol=5e-2, atol=5e-3):
            raise AssertionError("Pallas kernel (bf16) result mismatch vs reference")

    print("KERNEL_OK")
</pallas_src>

<mosaic_0001>
module attributes {stable_mosaic.version = 11 : i64} {
  func.func @_mhgrn_kernel(%arg0: i32, %arg1: memref<8x128xf32, #tpu.memory_space<vmem>>, %arg2: memref<1x4x8x8xf32, #tpu.memory_space<vmem>>, %arg3: memref<8x1xf32, #tpu.memory_space<vmem>>, %arg4: memref<8x1xf32, #tpu.memory_space<vmem>>, %arg5: memref<8x16xf32, #tpu.memory_space<vmem>>, %arg6: memref<128x512xf32, #tpu.memory_space<vmem>>, %arg7: memref<1x4x128x128xf32, #tpu.memory_space<vmem>>, %arg8: memref<2x128x128xf32, #tpu.memory_space<vmem>>, %arg9: memref<8x128xf32, #tpu.memory_space<vmem>>) attributes {dimension_semantics = [#tpu.dimension_semantics<parallel>], iteration_bounds = array<i64: 2>, scalar_prefetch = 0 : i64, scratch_operands = 0 : i64, tpu.core_type = #tpu.core_type<tc>, window_params = [{transform_indices = @transform_0, window_bounds = array<i64: 8, 128>}, {transform_indices = @transform_1, window_bounds = array<i64: 1, 4, 8, 8>}, {transform_indices = @transform_2, window_bounds = array<i64: 8, 1>}, {transform_indices = @transform_3, window_bounds = array<i64: 8, 1>}, {transform_indices = @transform_4, window_bounds = array<i64: 8, 16>}, {pipeline_mode = #tpu.pipeline_mode<synchronous>, transform_indices = @transform_5, window_bounds = array<i64: 128, 512>}, {pipeline_mode = #tpu.pipeline_mode<synchronous>, transform_indices = @transform_6, window_bounds = array<i64: 1, 4, 128, 128>}, {pipeline_mode = #tpu.pipeline_mode<synchronous>, transform_indices = @transform_7, window_bounds = array<i64: 2, 128, 128>}, {transform_indices = @transform_8, window_bounds = array<i64: 8, 128>}]} {
    %c0 = arith.constant 0 : index
    %c0_0 = arith.constant 0 : index
    %0 = vector.load %arg3[%c0, %c0_0] : memref<8x1xf32, #tpu.memory_space<vmem>>, vector<8x1xf32>
    %c0_1 = arith.constant 0 : index
    %c0_2 = arith.constant 0 : index
    %1 = vector.load %arg4[%c0_1, %c0_2] : memref<8x1xf32, #tpu.memory_space<vmem>>, vector<8x1xf32>
    %c0_3 = arith.constant 0 : index
    %c0_4 = arith.constant 0 : index
    %2 = vector.load %arg1[%c0_3, %c0_4] : memref<8x128xf32, #tpu.memory_space<vmem>>, vector<8x128xf32>
    %3 = vector.broadcast %0 : vector<8x1xf32> to vector<8x128xf32>
    %4 = arith.mulf %2, %3 : vector<8x128xf32>
    %c0_5 = arith.constant 0 : index
    %c0_6 = arith.constant 0 : index
    %5 = vector.load %arg5[%c0_5, %c0_6] : memref<8x16xf32, #tpu.memory_space<vmem>>, vector<8x16xf32>
    %c0_7 = arith.constant 0 : index
    %c0_8 = arith.constant 0 : index
    %c0_9 = arith.constant 0 : index
    %c0_10 = arith.constant 0 : index
    %6 = vector.load %arg2[%c0_7, %c0_8, %c0_9, %c0_10] : memref<1x4x8x8xf32, #tpu.memory_space<vmem>>, vector<1x4x8x8xf32>
    %7 = vector.shape_cast %6 : vector<1x4x8x8xf32> to vector<4x8x8xf32>
    %cst = arith.constant 0.000000e+00 : f32
    %8 = vector.broadcast %cst : f32 to vector<8x128xf32>
    %c0_11 = arith.constant 0 : index
    %c0_12 = arith.constant 0 : index
    %9 = vector.load %arg6[%c0_11, %c0_12] : memref<128x512xf32, #tpu.memory_space<vmem>>, vector<128x512xf32>
    %cst_13 = arith.constant dense<0.000000e+00> : vector<8x512xf32>
    %10 = tpu.matmul %4, %9, %cst_13 {dimension_numbers = #tpu.dot_dimension_numbers<[1], [0], [0], [1], [0, 0, 1, 1], [], []>} : vector<8x128xf32>, vector<128x512xf32>, vector<8x512xf32> -> vector<8x512xf32>
    %11 = vector.extract_strided_slice %10 {offsets = [0, 0], sizes = [8, 128], strides = [1, 1]} : vector<8x512xf32> to vector<8x128xf32>
    %12 = vector.extract_strided_slice %10 {offsets = [0, 128], sizes = [8, 128], strides = [1, 1]} : vector<8x512xf32> to vector<8x128xf32>
    %13 = vector.extract_strided_slice %10 {offsets = [0, 256], sizes = [8, 128], strides = [1, 1]} : vector<8x512xf32> to vector<8x128xf32>
    %14 = vector.extract_strided_slice %10 {offsets = [0, 384], sizes = [8, 128], strides = [1, 1]} : vector<8x512xf32> to vector<8x128xf32>
    %15 = vector.extract_strided_slice %7 {offsets = [0, 0, 0], sizes = [1, 8, 8], strides = [1, 1, 1]} : vector<4x8x8xf32> to vector<1x8x8xf32>
    %16 = vector.shape_cast %15 : vector<1x8x8xf32> to vector<8x8xf32>
    %cst_14 = arith.constant dense<0.000000e+00> : vector<8x128xf32>
    %17 = tpu.matmul %16, %11, %cst_14 {dimension_numbers = #tpu.dot_dimension_numbers<[1], [0], [0], [1], [0, 0, 1, 1], [], []>} : vector<8x8xf32>, vector<8x128xf32>, vector<8x128xf32> -> vector<8x128xf32>
    %18 = vector.extract_strided_slice %7 {offsets = [1, 0, 0], sizes = [1, 8, 8], strides = [1, 1, 1]} : vector<4x8x8xf32> to vector<1x8x8xf32>
    %19 = vector.shape_cast %18 : vector<1x8x8xf32> to vector<8x8xf32>
    %cst_15 = arith.constant dense<0.000000e+00> : vector<8x128xf32>
    %20 = tpu.matmul %19, %12, %cst_15 {dimension_numbers = #tpu.dot_dimension_numbers<[1], [0], [0], [1], [0, 0, 1, 1], [], []>} : vector<8x8xf32>, vector<8x128xf32>, vector<8x128xf32> -> vector<8x128xf32>
    %21 = vector.extract_strided_slice %7 {offsets = [2, 0, 0], sizes = [1, 8, 8], strides = [1, 1, 1]} : vector<4x8x8xf32> to vector<1x8x8xf32>
    %22 = vector.shape_cast %21 : vector<1x8x8xf32> to vector<8x8xf32>
    %cst_16 = arith.constant dense<0.000000e+00> : vector<8x128xf32>
    %23 = tpu.matmul %22, %13, %cst_16 {dimension_numbers = #tpu.dot_dimension_numbers<[1], [0], [0], [1], [0, 0, 1, 1], [], []>} : vector<8x8xf32>, vector<8x128xf32>, vector<8x128xf32> -> vector<8x128xf32>
    %24 = vector.extract_strided_slice %7 {offsets = [3, 0, 0], sizes = [1, 8, 8], strides = [1, 1, 1]} : vector<4x8x8xf32> to vector<1x8x8xf32>
    %25 = vector.shape_cast %24 : vector<1x8x8xf32> to vector<8x8xf32>
    %cst_17 = arith.constant dense<0.000000e+00> : vector<8x128xf32>
    %26 = tpu.matmul %25, %14, %cst_17 {dimension_numbers = #tpu.dot_dimension_numbers<[1], [0], [0], [1], [0, 0, 1, 1], [], []>} : vector<8x8xf32>, vector<8x128xf32>, vector<8x128xf32> -> vector<8x128xf32>
    %27 = arith.addf %17, %20 : vector<8x128xf32>
    %28 = arith.addf %27, %23 : vector<8x128xf32>
    %29 = arith.addf %28, %26 : vector<8x128xf32>
    %c0_18 = arith.constant 0 : index
    %c0_19 = arith.constant 0 : index
    %c0_20 = arith.constant 0 : index
    %30 = vector.load %arg8[%c0_18, %c0_19, %c0_20] : memref<2x128x128xf32, #tpu.memory_space<vmem>>, vector<1x128x128xf32>
    %31 = vector.shape_cast %30 : vector<1x128x128xf32> to vector<128x128xf32>
    %cst_21 = arith.constant dense<0.000000e+00> : vector<8x128xf32>
    %32 = tpu.matmul %29, %31, %cst_21 {dimension_numbers = #tpu.dot_dimension_numbers<[1], [0], [0], [1], [0, 0, 1, 1], [], []>} : vector<8x128xf32>, vector<128x128xf32>, vector<8x128xf32> -> vector<8x128xf32>
    %33 = vector.extract_strided_slice %29 {offsets = [0, 32], sizes = [8, 1], strides = [1, 1]} : vector<8x128xf32> to vector<8x1xf32>
    %34 = arith.mulf %33, %1 : vector<8x1xf32>
    %cst_22 = arith.constant 9.99999968E-21 : f32
    %35 = vector.broadcast %cst_22 : f32 to vector<8x1xf32>
    %36 = arith.addf %34, %35 : vector<8x1xf32>
    %37 = tpu.reciprocal %36 {approx = true} : vector<8x1xf32> -> vector<8x1xf32>
    %38 = arith.mulf %36, %37 : vector<8x1xf32>
    %cst_23 = arith.constant 2.000000e+00 : f32
    %39 = vector.broadcast %cst_23 : f32 to vector<8x1xf32>
    %40 = arith.subf %39, %38 : vector<8x1xf32>
    %41 = arith.mulf %37, %40 : vector<8x1xf32>
    %42 = arith.mulf %1, %41 : vector<8x1xf32>
    %43 = vector.broadcast %42 : vector<8x1xf32> to vector<8x128xf32>
    %44 = arith.mulf %32, %43 : vector<8x128xf32>
    %45 = arith.addf %8, %44 : vector<8x128xf32>
    %46 = vector.extract_strided_slice %5 {offsets = [0, 0], sizes = [8, 1], strides = [1, 1]} : vector<8x16xf32> to vector<8x1xf32>
    %47 = vector.broadcast %46 : vector<8x1xf32> to vector<8x128xf32>
    %48 = arith.mulf %17, %47 : vector<8x128xf32>
    %49 = vector.extract_strided_slice %5 {offsets = [0, 4], sizes = [8, 1], strides = [1, 1]} : vector<8x16xf32> to vector<8x1xf32>
    %50 = vector.broadcast %49 : vector<8x1xf32> to vector<8x128xf32>
    %51 = arith.mulf %20, %50 : vector<8x128xf32>
    %52 = arith.addf %48, %51 : vector<8x128xf32>
    %53 = vector.extract_strided_slice %5 {offsets = [0, 8], sizes = [8, 1], strides = [1, 1]} : vector<8x16xf32> to vector<8x1xf32>
    %54 = vector.broadcast %53 : vector<8x1xf32> to vector<8x128xf32>
    %55 = arith.mulf %23, %54 : vector<8x128xf32>
    %56 = arith.addf %52, %55 : vector<8x128xf32>
    %57 = vector.extract_strided_slice %5 {offsets = [0, 12], sizes = [8, 1], strides = [1, 1]} : vector<8x16xf32> to vector<8x1xf32>
    %58 = vector.broadcast %57 : vector<8x1xf32> to vector<8x128xf32>
    %59 = arith.mulf %26, %58 : vector<8x128xf32>
    %60 = arith.addf %56, %59 : vector<8x128xf32>
    %c0_24 = arith.constant 0 : index
    %c0_25 = arith.constant 0 : index
    %c0_26 = arith.constant 0 : index
    %c0_27 = arith.constant 0 : index
    %61 = vector.load %arg7[%c0_24, %c0_25, %c0_26, %c0_27] : memref<1x4x128x128xf32, #tpu.memory_space<vmem>>, vector<1x1x128x128xf32>
    %62 = vector.shape_cast %61 : vector<1x1x128x128xf32> to vector<128x128xf32>
    %cst_28 = arith.constant dense<0.000000e+00> : vector<8x128xf32>
    %63 = tpu.matmul %60, %62, %cst_28 {dimension_numbers = #tpu.dot_dimension_numbers<[1], [0], [0], [1], [0, 0, 1, 1], [], []>} : vector<8x128xf32>, vector<128x128xf32>, vector<8x128xf32> -> vector<8x128xf32>
    %64 = vector.extract_strided_slice %5 {offsets = [0, 1], sizes = [8, 1], strides = [1, 1]} : vector<8x16xf32> to vector<8x1xf32>
    %65 = vector.broadcast %64 : vector<8x1xf32> to vector<8x128xf32>
    %66 = arith.mulf %17, %65 : vector<8x128xf32>
    %67 = vector.extract_strided_slice %5 {offsets = [0, 5], sizes = [8, 1], strides = [1, 1]} : vector<8x16xf32> to vector<8x1xf32>
    %68 = vector.broadcast %67 : vector<8x1xf32> to vector<8x128xf32>
    %69 = arith.mulf %20, %68 : vector<8x128xf32>
    %70 = arith.addf %66, %69 : vector<8x128xf32>
    %71 = vector.extract_strided_slice %5 {offsets = [0, 9], sizes = [8, 1], strides = [1, 1]} : vector<8x16xf32> to vector<8x1xf32>
    %72 = vector.broadcast %71 : vector<8x1xf32> to vector<8x128xf32>
    %73 = arith.mulf %23, %72 : vector<8x128xf32>
    %74 = arith.addf %70, %73 : vector<8x128xf32>
    %75 = vector.extract_strided_slice %5 {offsets = [0, 13], sizes = [8, 1], strides = [1, 1]} : vector<8x16xf32> to vector<8x1xf32>
    %76 = vector.broadcast %75 : vector<8x1xf32> to vector<8x128xf32>
    %77 = arith.mulf %26, %76 : vector<8x128xf32>
    %78 = arith.addf %74, %77 : vector<8x128xf32>
    %c0_29 = arith.constant 0 : index
    %c1 = arith.constant 1 : index
    %c0_30 = arith.constant 0 : index
    %c0_31 = arith.constant 0 : index
    %79 = vector.load %arg7[%c0_29, %c1, %c0_30, %c0_31] : memref<1x4x128x128xf32, #tpu.memory_space<vmem>>, vector<1x1x128x128xf32>
    %80 = vector.shape_cast %79 : vector<1x1x128x128xf32> to vector<128x128xf32>
    %cst_32 = arith.constant dense<0.000000e+00> : vector<8x128xf32>
    %81 = tpu.matmul %78, %80, %cst_32 {dimension_numbers = #tpu.dot_dimension_numbers<[1], [0], [0], [1], [0, 0, 1, 1], [], []>} : vector<8x128xf32>, vector<128x128xf32>, vector<8x128xf32> -> vector<8x128xf32>
    %82 = vector.extract_strided_slice %5 {offsets = [0, 2], sizes = [8, 1], strides = [1, 1]} : vector<8x16xf32> to vector<8x1xf32>
    %83 = vector.broadcast %82 : vector<8x1xf32> to vector<8x128xf32>
    %84 = arith.mulf %17, %83 : vector<8x128xf32>
    %85 = vector.extract_strided_slice %5 {offsets = [0, 6], sizes = [8, 1], strides = [1, 1]} : vector<8x16xf32> to vector<8x1xf32>
    %86 = vector.broadcast %85 : vector<8x1xf32> to vector<8x128xf32>
    %87 = arith.mulf %20, %86 : vector<8x128xf32>
    %88 = arith.addf %84, %87 : vector<8x128xf32>
    %89 = vector.extract_strided_slice %5 {offsets = [0, 10], sizes = [8, 1], strides = [1, 1]} : vector<8x16xf32> to vector<8x1xf32>
    %90 = vector.broadcast %89 : vector<8x1xf32> to vector<8x128xf32>
    %91 = arith.mulf %23, %90 : vector<8x128xf32>
    %92 = arith.addf %88, %91 : vector<8x128xf32>
    %93 = vector.extract_strided_slice %5 {offsets = [0, 14], sizes = [8, 1], strides = [1, 1]} : vector<8x16xf32> to vector<8x1xf32>
    %94 = vector.broadcast %93 : vector<8x1xf32> to vector<8x128xf32>
    %95 = arith.mulf %26, %94 : vector<8x128xf32>
    %96 = arith.addf %92, %95 : vector<8x128xf32>
    %c0_33 = arith.constant 0 : index
    %c2 = arith.constant 2 : index
    %c0_34 = arith.constant 0 : index
    %c0_35 = arith.constant 0 : index
    %97 = vector.load %arg7[%c0_33, %c2, %c0_34, %c0_35] : memref<1x4x128x128xf32, #tpu.memory_space<vmem>>, vector<1x1x128x128xf32>
    %98 = vector.shape_cast %97 : vector<1x1x128x128xf32> to vector<128x128xf32>
    %cst_36 = arith.constant dense<0.000000e+00> : vector<8x128xf32>
    %99 = tpu.matmul %96, %98, %cst_36 {dimension_numbers = #tpu.dot_dimension_numbers<[1], [0], [0], [1], [0, 0, 1, 1], [], []>} : vector<8x128xf32>, vector<128x128xf32>, vector<8x128xf32> -> vector<8x128xf32>
    %100 = vector.extract_strided_slice %5 {offsets = [0, 3], sizes = [8, 1], strides = [1, 1]} : vector<8x16xf32> to vector<8x1xf32>
    %101 = vector.broadcast %100 : vector<8x1xf32> to vector<8x128xf32>
    %102 = arith.mulf %17, %101 : vector<8x128xf32>
    %103 = vector.extract_strided_slice %5 {offsets = [0, 7], sizes = [8, 1], strides = [1, 1]} : vector<8x16xf32> to vector<8x1xf32>
    %104 = vector.broadcast %103 : vector<8x1xf32> to vector<8x128xf32>
    %105 = arith.mulf %20, %104 : vector<8x128xf32>
    %106 = arith.addf %102, %105 : vector<8x128xf32>
    %107 = vector.extract_strided_slice %5 {offsets = [0, 11], sizes = [8, 1], strides = [1, 1]} : vector<8x16xf32> to vector<8x1xf32>
    %108 = vector.broadcast %107 : vector<8x1xf32> to vector<8x128xf32>
    %109 = arith.mulf %23, %108 : vector<8x128xf32>
    %110 = arith.addf %106, %109 : vector<8x128xf32>
    %111 = vector.extract_strided_slice %5 {offsets = [0, 15], sizes = [8, 1], strides = [1, 1]} : vector<8x16xf32> to vector<8x1xf32>
    %112 = vector.broadcast %111 : vector<8x1xf32> to vector<8x128xf32>
    %113 = arith.mulf %26, %112 : vector<8x128xf32>
    %114 = arith.addf %110, %113 : vector<8x128xf32>
    %c0_37 = arith.constant 0 : index
    %c3 = arith.constant 3 : index
    %c0_38 = arith.constant 0 : index
    %c0_39 = arith.constant 0 : index
    %115 = vector.load %arg7[%c0_37, %c3, %c0_38, %c0_39] : memref<1x4x128x128xf32, #tpu.memory_space<vmem>>, vector<1x1x128x128xf32>
    %116 = vector.shape_cast %115 : vector<1x1x128x128xf32> to vector<128x128xf32>
    %cst_40 = arith.constant dense<0.000000e+00> : vector<8x128xf32>
    %117 = tpu.matmul %114, %116, %cst_40 {dimension_numbers = #tpu.dot_dimension_numbers<[1], [0], [0], [1], [0, 0, 1, 1], [], []>} : vector<8x128xf32>, vector<128x128xf32>, vector<8x128xf32> -> vector<8x128xf32>
    %118 = vector.extract_strided_slice %7 {offsets = [0, 0, 0], sizes = [1, 8, 8], strides = [1, 1, 1]} : vector<4x8x8xf32> to vector<1x8x8xf32>
    %119 = vector.shape_cast %118 : vector<1x8x8xf32> to vector<8x8xf32>
    %cst_41 = arith.constant dense<0.000000e+00> : vector<8x128xf32>
    %120 = tpu.matmul %119, %63, %cst_41 {dimension_numbers = #tpu.dot_dimension_numbers<[1], [0], [0], [1], [0, 0, 1, 1], [], []>} : vector<8x8xf32>, vector<8x128xf32>, vector<8x128xf32> -> vector<8x128xf32>
    %121 = vector.extract_strided_slice %7 {offsets = [1, 0, 0], sizes = [1, 8, 8], strides = [1, 1, 1]} : vector<4x8x8xf32> to vector<1x8x8xf32>
    %122 = vector.shape_cast %121 : vector<1x8x8xf32> to vector<8x8xf32>
    %cst_42 = arith.constant dense<0.000000e+00> : vector<8x128xf32>
    %123 = tpu.matmul %122, %81, %cst_42 {dimension_numbers = #tpu.dot_dimension_numbers<[1], [0], [0], [1], [0, 0, 1, 1], [], []>} : vector<8x8xf32>, vector<8x128xf32>, vector<8x128xf32> -> vector<8x128xf32>
    %124 = vector.extract_strided_slice %7 {offsets = [2, 0, 0], sizes = [1, 8, 8], strides = [1, 1, 1]} : vector<4x8x8xf32> to vector<1x8x8xf32>
    %125 = vector.shape_cast %124 : vector<1x8x8xf32> to vector<8x8xf32>
    %cst_43 = arith.constant dense<0.000000e+00> : vector<8x128xf32>
    %126 = tpu.matmul %125, %99, %cst_43 {dimension_numbers = #tpu.dot_dimension_numbers<[1], [0], [0], [1], [0, 0, 1, 1], [], []>} : vector<8x8xf32>, vector<8x128xf32>, vector<8x128xf32> -> vector<8x128xf32>
    %127 = vector.extract_strided_slice %7 {offsets = [3, 0, 0], sizes = [1, 8, 8], strides = [1, 1, 1]} : vector<4x8x8xf32> to vector<1x8x8xf32>
    %128 = vector.shape_cast %127 : vector<1x8x8xf32> to vector<8x8xf32>
    %cst_44 = arith.constant dense<0.000000e+00> : vector<8x128xf32>
    %129 = tpu.matmul %128, %117, %cst_44 {dimension_numbers = #tpu.dot_dimension_numbers<[1], [0], [0], [1], [0, 0, 1, 1], [], []>} : vector<8x8xf32>, vector<8x128xf32>, vector<8x128xf32> -> vector<8x128xf32>
    %130 = arith.addf %120, %123 : vector<8x128xf32>
    %131 = arith.addf %130, %126 : vector<8x128xf32>
    %132 = arith.addf %131, %129 : vector<8x128xf32>
    %c1_45 = arith.constant 1 : index
    %c0_46 = arith.constant 0 : index
    %c0_47 = arith.constant 0 : index
    %133 = vector.load %arg8[%c1_45, %c0_46, %c0_47] : memref<2x128x128xf32, #tpu.memory_space<vmem>>, vector<1x128x128xf32>
    %134 = vector.shape_cast %133 : vector<1x128x128xf32> to vector<128x128xf32>
    %cst_48 = arith.constant dense<0.000000e+00> : vector<8x128xf32>
    %135 = tpu.matmul %132, %134, %cst_48 {dimension_numbers = #tpu.dot_dimension_numbers<[1], [0], [0], [1], [0, 0, 1, 1], [], []>} : vector<8x128xf32>, vector<128x128xf32>, vector<8x128xf32> -> vector<8x128xf32>
    %136 = vector.extract_strided_slice %132 {offsets = [0, 32], sizes = [8, 1], strides = [1, 1]} : vector<8x128xf32> to vector<8x1xf32>
    %137 = arith.mulf %136, %1 : vector<8x1xf32>
    %cst_49 = arith.constant 9.99999968E-21 : f32
    %138 = vector.broadcast %cst_49 : f32 to vector<8x1xf32>
    %139 = arith.addf %137, %138 : vector<8x1xf32>
    %140 = tpu.reciprocal %139 {approx = true} : vector<8x1xf32> -> vector<8x1xf32>
    %141 = arith.mulf %139, %140 : vector<8x1xf32>
    %cst_50 = arith.constant 2.000000e+00 : f32
    %142 = vector.broadcast %cst_50 : f32 to vector<8x1xf32>
    %143 = arith.subf %142, %141 : vector<8x1xf32>
    %144 = arith.mulf %140, %143 : vector<8x1xf32>
    %145 = arith.mulf %1, %144 : vector<8x1xf32>
    %146 = vector.broadcast %145 : vector<8x1xf32> to vector<8x128xf32>
    %147 = arith.mulf %135, %146 : vector<8x128xf32>
    %148 = arith.addf %45, %147 : vector<8x128xf32>
    %c0_51 = arith.constant 0 : index
    %c0_52 = arith.constant 0 : index
    %149 = vector.load %arg9[%c0_51, %c0_52] : memref<8x128xf32, #tpu.memory_space<vmem>>, vector<8x128xf32>
    tpu.vector_store %arg9[%c0_51, %c0_52], %148 {strides = array<i32>} : memref<8x128xf32, #tpu.memory_space<vmem>>, vector<8x128xf32>,
    return
  }
  func.func @transform_0(%arg0: i32) -> (i32, i32) {
    %c0_i32 = arith.constant 0 : i32
    %c0_i32_0 = arith.constant 0 : i32
    return %arg0, %c0_i32 : i32, i32
  }
  func.func @transform_1(%arg0: i32) -> (i32, i32, i32, i32) {
    %c0_i32 = arith.constant 0 : i32
    %c0_i32_0 = arith.constant 0 : i32
    %c0_i32_1 = arith.constant 0 : i32
    %c0_i32_2 = arith.constant 0 : i32
    return %arg0, %c0_i32, %c0_i32_0, %c0_i32_1 : i32, i32, i32, i32
  }
  func.func @transform_2(%arg0: i32) -> (i32, i32) {
    %c0_i32 = arith.constant 0 : i32
    %c0_i32_0 = arith.constant 0 : i32
    return %arg0, %c0_i32 : i32, i32
  }
  func.func @transform_3(%arg0: i32) -> (i32, i32) {
    %c0_i32 = arith.constant 0 : i32
    %c0_i32_0 = arith.constant 0 : i32
    return %arg0, %c0_i32 : i32, i32
  }
  func.func @transform_4(%arg0: i32) -> (i32, i32) {
    %c0_i32 = arith.constant 0 : i32
    %c0_i32_0 = arith.constant 0 : i32
    return %arg0, %c0_i32 : i32, i32
  }
  func.func @transform_5(%arg0: i32) -> (i32, i32) {
    %c0_i32 = arith.constant 0 : i32
    %c0_i32_0 = arith.constant 0 : i32
    %c0_i32_1 = arith.constant 0 : i32
    return %c0_i32, %c0_i32_0 : i32, i32
  }
  func.func @transform_6(%arg0: i32) -> (i32, i32, i32, i32) {
    %c0_i32 = arith.constant 0 : i32
    %c0_i32_0 = arith.constant 0 : i32
    %c0_i32_1 = arith.constant 0 : i32
    %c0_i32_2 = arith.constant 0 : i32
    %c0_i32_3 = arith.constant 0 : i32
    return %c0_i32, %c0_i32_0, %c0_i32_1, %c0_i32_2 : i32, i32, i32, i32
  }
  func.func @transform_7(%arg0: i32) -> (i32, i32, i32) {
    %c0_i32 = arith.constant 0 : i32
    %c0_i32_0 = arith.constant 0 : i32
    %c0_i32_1 = arith.constant 0 : i32
    %c0_i32_2 = arith.constant 0 : i32
    return %c0_i32, %c0_i32_0, %c0_i32_1 : i32, i32, i32
  }
  func.func @transform_8(%arg0: i32) -> (i32, i32) {
    %c0_i32 = arith.constant 0 : i32
    %c0_i32_0 = arith.constant 0 : i32
    return %arg0, %c0_i32 : i32, i32
  }
}

</mosaic_0001>

<bundles_post_ra>
// kernel: tpu_custom_call.1
= control target key start
LH: loop header
LB: loop body
LE: loop exit
PB: predicated region body
PF: predicated region fallthrough
CT: control target
= control target key end

     0   :  { %s1989_s0 = inlined_call_operand.vmem [shape: f32[16,128], index: 0, kind: input, shape index: {}]   ;;  %s1990_s1 = inlined_call_operand.hbm [shape: f32[2,4,8,8], index: 1, kind: input, shape index: {}]   ;;  %s1991_s2 = inlined_call_operand.vmem [shape: f32[16,1], index: 2, kind: input, shape index: {}]   ;;  %s1992_s3 = inlined_call_operand.vmem [shape: f32[16,1], index: 3, kind: input, shape index: {}]   ;;  %s1993_s4 = inlined_call_operand.vmem [shape: f32[16,16], index: 4, kind: input, shape index: {}]   ;;  %s1994_s5 = inlined_call_operand.hbm [shape: f32[128,512], index: 5, kind: input, shape index: {}]   ;;  %s1995_s6 = inlined_call_operand.hbm [shape: f32[1,4,128,128], index: 6, kind: input, shape index: {}]   ;;  %s1996_s7 = inlined_call_operand.hbm [shape: f32[2,128,128], index: 7, kind: input, shape index: {}]   ;;  %s1997_s8 = inlined_call_operand.hbm [shape: f32[16,128], index: 8, kind: output, shape index: {}]  }
   0x1   :  { %2000 = sst [smem:[#allocation15_spill]] %s1994_s5 }
   0x2   :  { %2001 = sst [smem:[#allocation16_spill]] %s1995_s6 }
   0x3   :  { %13 = vsyncpa [#allocation3], 0 }
   0x4   :  { %15 = vsyncpa [#allocation3 + $0x1], 0 }
   0x5   :  { %16 = vsyncpa [#allocation6], 0 }
   0x6   :  { %17 = vsyncpa [#allocation9], 0 }
   0x7   :  { %18 = vsyncpa [#allocation4], 0 }
   0x8   :  { %20 = vsyncpa [#allocation4 + $0x1], 0  ;;  %s1717_s27 = smov 0   ;;  %s1719_s28 = smov 0  }
   0x9   :  { %s1721_s29 = smov 0   ;;  %s1723_s30 = smov 0  }
   0xa LB: > { %s1738_s9 = sadd.s32 4294967295, %s1645_s30   ;;  %s1297_s10 = sadd.s32 4294967294, %s1645_s30   ;;  %s1645_s30 = sphi %s1723_s30, %s2016_s30   ;;  %s1641_s29 = sphi %s1721_s29, %s2015_s29   ;;  %s1637_s28 = sphi %s1719_s28, %s2014_s28   ;;  %s1633_s27 = sphi %s1717_s27, %s2013_s27  }
   0xb   : > { %p72_p0 = scmp.ne.s32.totalorder %s1637_s28, %s1633_s27  ;;  %p73_p1 = scmp.eq.s32.totalorder %s1738_s9, 0 }
   0xc   : > { %p237_p2 = scmp.eq.s32.totalorder %s1738_s9, 1  ;;  %p243_p3 = scmp.eq.s32.totalorder %s1297_s10, 1 }
   0xd   : > { %p1747_p4 = por %p73_p1, %p72_p0  ;;  %p1298_p5 = scmp.ge.s32.totalorder %s1645_s30, 1 }
   0xe   : > { %p1752_p6 = por %p243_p3, %p72_p0  ;;  %p250_p7 = scmp.lt.s32.totalorder %s1645_s30, 3 }
   0xf   : > { %s2004_s5 = sld [smem:[#allocation15_spill]]  ;;  %s1647_s17 = smov [#allocation5]  }
  0x10   : > { %p1760_p8 = pnand %p1298_p5, %p250_p7  ;;  %s263_s18 = sshll.u32 %s1647_s17, 4  ;;  %s264_s18 = int_to_ptr.vmem [resolvable:$true] %s263_s18 }
  0x11   : > { %s2007_s6 = sld [smem:[#allocation16_spill]]  ;;  %s1648_s23 = smov 512  }
  0x12   : > { %p1345_p9 = pneg %p1760_p8  ;;  %s1649_s24 = smov 32  }
  0x13   : > { %s1650_s25 = smov [#allocation7]   ;;  %s1998_s10 = smov 128  }
  0x14   : > { %p1768_p10 = pnand %p1345_p9, %p73_p1  ;;  %s277_s26 = sshll.u32 %s1650_s25, 4  ;;  %s278_s26 = int_to_ptr.vmem [resolvable:$true] %s277_s26 }
  0x15   : > { %s261_s15 = sshll.u32 %s2004_s5, 4  ;;  %s1999_s13 = smov 8   ;;  %s262_s15 = int_to_ptr.hbm [resolvable:$true] %s261_s15 }
  0x16   : > { %1348 = dma.hbm_to_vmem [thread:$0]  (!%p1768_p10), %s262_s15, 8192, %s264_s18, [#allocation6], %s1648_s23, %s1648_s23, %s1649_s24  }
  0x17   : > { %s275_s22 = sshll.u32 %s2007_s6, 4  ;;  %s289_s15 = sshll.u32 %s1996_s7, 4  ;;  %s276_s22 = int_to_ptr.hbm [resolvable:$true] %s275_s22  ;;  %s290_s15 = int_to_ptr.hbm [resolvable:$true] %s289_s15 }
  0x18   : > { %1351 = dma.hbm_to_vmem [thread:$0]  (!%p1768_p10), %s276_s22, 8192, %s278_s26, [#allocation6], %s1998_s10, %s1998_s10, %s1999_s13  }
  0x19   : > { %s1653_s18 = smov [#allocation8]   ;;  %s1792_s21 = sadd.s32 1, %s1645_s30  }
  0x1a   : > { %s291_s20 = sshll.u32 %s1653_s18, 4  ;;  %s56_s23 = ssub.s32 %s1645_s30, %s1792_s21  ;;  %s292_s20 = int_to_ptr.vmem [resolvable:$true] %s291_s20 }
  0x1b   : > { %1354 = dma.hbm_to_vmem [thread:$0]  (!%p1768_p10), %s290_s15, 4096, %s292_s20, [#allocation9], %s1998_s10, %s1998_s10, %s1999_s13  }
  0x1c   : > { %s59_s22 = sadd.s32 1, %s1641_s29  ;;  %p57_p12 = scmp.eq.s32.totalorder %s56_s23, 0 }
  0x1d   : > { %p66_p13 = scmp.ne.s32.totalorder %s1641_s29, %s1637_s28  ;;  %p67_p0 = scmp.eq.s32.totalorder %s1645_s30, 0 }
  0x1e   : > { %s1801_s24 = scalar_select %p57_p12, %s1641_s29, %s59_s22  }
  0x1f   : > { %p1805_p3 = por %p237_p2, %p66_p13  ;;  %p1366_p5 = scmp.lt.s32.totalorder %s1645_s30, 2 }
  0x20   : > { %s312_s19 = sand.u32 1, %s1641_s29   ;;  %s1328_s26 = sshll.u32 %s1645_s30, 5 }
  0x21   : > { %p68_p7 = por %p67_p0, %p66_p13  ;;  %s1303_s14 = sshll.u32 %s312_s19, 5 }
  0x22   : > { %s321_s18 = scalar_lea.hbm %s1990_s1, %s1328_s26  ;;  %s316_s23 = scalar_lea.vmem [#allocation2], %s1303_s14 }
  0x23   : > { %s322_s20 = sshll.u32 %s321_s18, 4  ;;  %s324_s10 = sshll.u32 %s316_s23, 4  ;;  %s323_s20 = int_to_ptr.hbm [resolvable:$true] %s322_s20  ;;  %s325_s10 = int_to_ptr.vmem [resolvable:$true] %s324_s10 }
  0x24   : > { %p1815_p9 = pnand %p1366_p5, %p68_p7  ;;  %s313_s13 = scalar_lea.sflag [#allocation3], %s312_s19 }
  0x25   : > { %s1541_s5 = sshra.s32 %s323_s20, 4  ;;  %s1548_s14 = scalar_lea.hbm %s1990_s1, 64  ;;  %s1542_s5 = int_to_ptr.hbm [resolvable:$true] %s1541_s5 }
  0x26   : > { %s1543_s6 = scalar_lea.hbm %s1542_s5, 32  ;;  %p1545_p10 = pneg %p1815_p9 }
  0x27   : > { %p1544_p2 = scmp.ne.s32.totalorder %s1542_s5, %s1543_s6  ;;  %p1549_p0 = scmp.lt.s32.totalorder %s1542_s5, %s1990_s1 }
  0x28   : > { %p1550_p5 = scmp.lt.s32.totalorder %s1548_s14, %s1543_s6 }
  0x29   : > { %p1546_p12 = pnand %p1545_p10, %p1544_p2 }
  0x2a   : > { %p1551_p7 = por %p1550_p5, %p1549_p0 }
  0x2b   : > { %p1547_p13 = pneg %p1546_p12 }
  0x2d   : > { %p1552_p11 = pnand %p1551_p7, %p1547_p13 }
  0x2f   : > { %1555 = shalt.err (!%p1552_p11)
}
  0x30   : > { %s2010_s19 = smov 8   ;;  %s2011_s23 = smov 128  }
  0x31   : > { %1358 = dma.hbm_to_vmem [thread:$0]  (!%p1815_p9), %s323_s20, 512, %s325_s10, %s313_s13, %s2011_s23, %s2011_s23, %s2010_s19  }
  0x32   : > { %357 = sbr.rel (%p1760_p8) target bundleno = 993 (0x3e1), region = 52  ;;  %s1835_s26 = sand.u32 (!%p1760_p8), 1, %s1637_s28  }
  0x33   : > { %s1307_s5 = sshll.u32 (!%p1760_p8), %s1835_s26, 5  ;;  %s360_s6 = scalar_lea.sflag (!%p1760_p8), [#allocation3], %s1835_s26 }
  0x34   : > { %s1839_s17 = scalar_lea.vmem (!%p1760_p8), [#allocation2], %s1307_s5 }
  0x37   : > { %1616 = dma.done.wait (%p1747_p4), %s360_s6, 512  }
  0x38   : > { %1618 = vsyncadd (%p1747_p4), %s360_s6, 4294966784 }
  0x39   : > { %1620 = dma.done.wait (%p73_p1), [#allocation6], 16384  }
  0x3a   : > { %1622 = vsyncadd (%p73_p1), [#allocation6], 4294950912 }
  0x3b   : > { %1624 = dma.done.wait (%p73_p1), [#allocation9], 4096  }
  0x3c   : > { %1626 = vsyncadd (%p73_p1), [#allocation9], 4294963200  ;;  %p428_p8 = scmp.lt.s32.totalorder %s1738_s9, 1  ;;  %v1654_v0 = vmov 0   ;;  %v518_v2 = vld [vmem:[#allocation5 + $0x1e0] sm:$0xff]  ;;  %v519_v3 = vld [vmem:[#allocation5 + $0x1e8] sm:$0xff] }
  0x3d   : > { %1428 = vset.pattern.permute.xlu0 %v1654_v0  ;;  %522 = vmatpush.msra.mxu0 %v518_v2  ;;  %v520_v4 = vld [vmem:[#allocation5 + $0x1f0] sm:$0xff]  ;;  %v521_v5 = vld [vmem:[#allocation5 + $0x1f8] sm:$0xff]  ;;  %v514_v6 = vld [vmem:[#allocation5 + $0x1c0] sm:$0xff]  ;;  %vm602_vm0 = vcmask 64512   ;;  %s1670_s10 = smov 32   ;;  %s1325_s13 = sshll.u32 %s1738_s9, 3 }
  0x3e   : > { %s429_s11 = scalar_select %p428_p8, %s1738_s9, 1  ;;  %542 = vmatpush.msra.mxu1 %v519_v3  ;;  %562 = vmatpush.msra.mxu2 %v520_v4  ;;  %v515_v7 = vld [vmem:[#allocation5 + $0x1c8] sm:$0xff]  ;;  %v516_v8 = vld [vmem:[#allocation5 + $0x1d0] sm:$0xff]  ;;  %v517_v9 = vld [vmem:[#allocation5 + $0x1d8] sm:$0xff]  ;;  %v1655_v4 = vmov 6  }
  0x3f   : > { %582 = vmatpush.msra.mxu3 %v521_v5  ;;  %523 = vmatpush.msra.mxu0 %v514_v6  ;;  %v510_v10 = vld [vmem:[#allocation5 + $0x1a0] sm:$0xff]  ;;  %v511_v11 = vld [vmem:[#allocation5 + $0x1a8] sm:$0xff]  ;;  %v512_v12 = vld [vmem:[#allocation5 + $0x1b0] sm:$0xff]  ;;  %v1656_v5 = vmov 1   ;;  %v1657_v6 = vmov 9   ;;  %s1145_s14 = scalar_lea.hbm %s1997_s8, %s1325_s13 }
  0x40   : > { %s1856_s16 = sshll.u32 %s429_s11, 3  ;;  %543 = vmatpush.msra.mxu1 %v515_v7  ;;  %563 = vmatpush.msra.mxu2 %v516_v8  ;;  %v513_v13 = vld [vmem:[#allocation5 + $0x1b8] sm:$0xff]  ;;  %v506_v14 = vld [vmem:[#allocation5 + $0x180] sm:$0xff]  ;;  %v507_v15 = vld [vmem:[#allocation5 + $0x188] sm:$0xff]  ;;  %s1149_s19 = sshll.u32 %s1145_s14, 4  ;;  %s1150_s19 = int_to_ptr.hbm [resolvable:$true] %s1149_s19 }
  0x41   : > { %s435_s20 = scalar_lea.vmem %s1991_s2, %s1856_s16  ;;  %583 = vmatpush.msra.mxu3 %v517_v9  ;;  %524 = vmatpush.msra.mxu0 %v510_v10  ;;  %v508_v16 = vld [vmem:[#allocation5 + $0x190] sm:$0xff]  ;;  %v509_v17 = vld [vmem:[#allocation5 + $0x198] sm:$0xff]  ;;  %v502_v18 = vld [vmem:[#allocation5 + $0x160] sm:$0xff]  ;;  %s443_s15 = scalar_lea.vmem %s1993_s4, %s1856_s16  ;;  %v1658_v10 = vmov 5  }
  0x42   : > { %v444_v1 = vld [vmem:[%s435_s20] sm:$0xff]  ;;  %544 = vmatpush.msra.mxu1 %v511_v11  ;;  %564 = vmatpush.msra.mxu2 %v512_v12  ;;  %v503_v19 = vld [vmem:[#allocation5 + $0x168] sm:$0xff]  ;;  %v504_v20 = vld [vmem:[#allocation5 + $0x170] sm:$0xff]  ;;  %s431_s23 = scalar_lea.vmem %s1989_s0, %s1856_s16  ;;  %v1659_v11 = vmov 3   ;;  %v1660_v12 = vmov 2   ;;  %s439_s11 = scalar_lea.vmem %s1992_s3, %s1856_s16 }
  0x43   : > { %449 = vperm.xlu0 %1428, %v444_v1   ;;  %584 = vmatpush.msra.mxu3 %v513_v13  ;;  %v505_v21 = vld [vmem:[#allocation5 + $0x178] sm:$0xff]  ;;  %v498_v22 = vld [vmem:[#allocation5 + $0x140] sm:$0xff]  ;;  %v499_v23 = vld [vmem:[#allocation5 + $0x148] sm:$0xff]  ;;  %v1661_v13 = vmov 10   ;;  %s1311_s16 = sshll.u32 %s1835_s26, 3  ;;  %s1585_s9 = sshra.s32 %s1150_s19, 4  ;;  %s1586_s9 = int_to_ptr.hbm [resolvable:$true] %s1585_s9 }
  0x44   : > { %525 = vmatpush.msra.mxu0 %v506_v14  ;;  %545 = vmatpush.msra.mxu1 %v507_v15  ;;  %v500_v24 = vld [vmem:[#allocation5 + $0x150] sm:$0xff]  ;;  %v501_v25 = vld [vmem:[#allocation5 + $0x158] sm:$0xff]  ;;  %v494_v26 = vld [vmem:[#allocation5 + $0x120] sm:$0xff]  ;;  %v1662_v14 = vmov 13   ;;  %v1663_v15 = vmov 14   ;;  %s1587_s5 = scalar_lea.hbm %s1586_s9, 8  ;;  %p1592_p9 = scmp.lt.s32.totalorder %s1586_s9, %s1997_s8 }
  0x45   : > { %565 = vmatpush.msra.mxu2 %v508_v16  ;;  %585 = vmatpush.msra.mxu3 %v509_v17  ;;  %v495_v27 = vld [vmem:[#allocation5 + $0x128] sm:$0xff]  ;;  %v496_v28 = vld [vmem:[#allocation5 + $0x130] sm:$0xff]  ;;  %v497_v29 = vld [vmem:[#allocation5 + $0x138] sm:$0xff]  ;;  %v1664_v16 = vmov 8   ;;  %v1665_v17 = vmov 11   ;;  %p1588_p1 = scmp.ne.s32.totalorder %s1586_s9, %s1587_s5 }
  0x46   : > { %526 = vmatpush.msra.mxu0 %v502_v18  ;;  %546 = vmatpush.msra.mxu1 %v503_v19  ;;  %v490_v30 = vld [vmem:[#allocation5 + $0x100] sm:$0xff]  ;;  %v491_v31 = vld [vmem:[#allocation5 + $0x108] sm:$0xff]  ;;  %v492_v32 = vld [vmem:[#allocation5 + $0x110] sm:$0xff] }
  0x47   : > { %566 = vmatpush.msra.mxu2 %v504_v20  ;;  %586 = vmatpush.msra.mxu3 %v505_v21  ;;  %v493_v33 = vld [vmem:[#allocation5 + $0x118] sm:$0xff]  ;;  %v486_v34 = vld [vmem:[#allocation5 + $0xe0] sm:$0xff]  ;;  %v487_v35 = vld [vmem:[#allocation5 + $0xe8] sm:$0xff]  ;;  %p1589_p4 = pnand %p1588_p1, %p1805_p3 }
  0x48   : > { %527 = vmatpush.msra.mxu0 %v498_v22  ;;  %547 = vmatpush.msra.mxu1 %v499_v23  ;;  %v488_v36 = vld [vmem:[#allocation5 + $0xf0] sm:$0xff]  ;;  %v489_v37 = vld [vmem:[#allocation5 + $0xf8] sm:$0xff]  ;;  %v482_v38 = vld [vmem:[#allocation5 + $0xc0] sm:$0xff]  ;;  %v1666_v22 = vmov 7   ;;  %v1667_v23 = vmov 12  }
  0x49   : > { %567 = vmatpush.msra.mxu2 %v500_v24  ;;  %587 = vmatpush.msra.mxu3 %v501_v25  ;;  %v483_v39 = vld [vmem:[#allocation5 + $0xc8] sm:$0xff]  ;;  %v484_v40 = vld [vmem:[#allocation5 + $0xd0] sm:$0xff]  ;;  %v485_v41 = vld [vmem:[#allocation5 + $0xd8] sm:$0xff]  ;;  %p1590_p11 = pneg %p1589_p4 }
  0x4a   : > { %528 = vmatpush.msra.mxu0 %v494_v26  ;;  %548 = vmatpush.msra.mxu1 %v495_v27  ;;  %v478_v42 = vld [vmem:[#allocation5 + $0xa0] sm:$0xff]  ;;  %v479_v43 = vld [vmem:[#allocation5 + $0xa8] sm:$0xff]  ;;  %v480_v44 = vld [vmem:[#allocation5 + $0xb0] sm:$0xff] }
  0x4b   : > { %568 = vmatpush.msra.mxu2 %v496_v28  ;;  %588 = vmatpush.msra.mxu3 %v497_v29  ;;  %v481_v45 = vld [vmem:[#allocation5 + $0xb8] sm:$0xff]  ;;  %v474_v46 = vld [vmem:[#allocation5 + $0x80] sm:$0xff]  ;;  %v475_v47 = vld [vmem:[#allocation5 + $0x88] sm:$0xff] }
  0x4c   : > { %529 = vmatpush.msra.mxu0 %v490_v30  ;;  %549 = vmatpush.msra.mxu1 %v491_v31  ;;  %v476_v48 = vld [vmem:[#allocation5 + $0x90] sm:$0xff]  ;;  %v477_v49 = vld [vmem:[#allocation5 + $0x98] sm:$0xff]  ;;  %v470_v50 = vld [vmem:[#allocation5 + $0x60] sm:$0xff]  ;;  %v1668_v30 = vmov 4  }
  0x4d   : > { %569 = vmatpush.msra.mxu2 %v492_v32  ;;  %589 = vmatpush.msra.mxu3 %v493_v33  ;;  %v471_v51 = vld [vmem:[#allocation5 + $0x68] sm:$0xff]  ;;  %v472_v52 = vld [vmem:[#allocation5 + $0x70] sm:$0xff]  ;;  %v473_v53 = vld [vmem:[#allocation5 + $0x78] sm:$0xff]  ;;  %v1669_v32 = vmov 15  }
  0x4e   : > { %530 = vmatpush.msra.mxu0 %v486_v34  ;;  %550 = vmatpush.msra.mxu1 %v487_v35  ;;  %v466_v54 = vld [vmem:[#allocation5 + $0x40] sm:$0xff]  ;;  %v467_v55 = vld [vmem:[#allocation5 + $0x48] sm:$0xff]  ;;  %v468_v56 = vld [vmem:[#allocation5 + $0x50] sm:$0xff] }
  0x4f   : > { %570 = vmatpush.msra.mxu2 %v488_v36  ;;  %590 = vmatpush.msra.mxu3 %v489_v37  ;;  %v469_v57 = vld [vmem:[#allocation5 + $0x58] sm:$0xff]  ;;  %v462_v58 = vld [vmem:[#allocation5 + $0x20] sm:$0xff]  ;;  %v463_v59 = vld [vmem:[#allocation5 + $0x28] sm:$0xff] }
  0x50   : > { %531 = vmatpush.msra.mxu0 %v482_v38  ;;  %551 = vmatpush.msra.mxu1 %v483_v39  ;;  %v464_v60 = vld [vmem:[#allocation5 + $0x30] sm:$0xff]  ;;  %v465_v61 = vld [vmem:[#allocation5 + $0x38] sm:$0xff]  ;;  %v458_v62 = vld [vmem:[#allocation5] sm:$0xff] }
  0x51   : > { %571 = vmatpush.msra.mxu2 %v484_v40  ;;  %591 = vmatpush.msra.mxu3 %v485_v41  ;;  %v459_v63 = vld [vmem:[#allocation5 + $0x8] sm:$0xff]  ;;  %v460_v1 = vld [vmem:[#allocation5 + $0x10] sm:$0xff]  ;;  %v461_v2 = vld [vmem:[#allocation5 + $0x18] sm:$0xff] }
  0x52   : > { %532 = vmatpush.msra.mxu0 %v478_v42  ;;  %552 = vmatpush.msra.mxu1 %v479_v43  ;;  %v1866_v3 = vld [vmem:[%s443_s15] sm:$0xff]  ;;  %v713_v18 = vld [vmem:[#allocation8 + $0x78] sm:$0xff]  ;;  %v712_v19 = vld [vmem:[#allocation8 + $0x70] sm:$0xff]  ;;  %s427_s15 = scalar_lea.vmem [#allocation10], %s1311_s16 }
  0x53   : > { %572 = vmatpush.msra.mxu2 %v480_v44  ;;  %592 = vmatpush.msra.mxu3 %v481_v45  ;;  %v446_v7 = vld [vmem:[%s431_s23] sm:$0xff]  ;;  %v711_v20 = vld [vmem:[#allocation8 + $0x68] sm:$0xff]  ;;  %v1894_v26 = vld [vmem:[%s1839_s17 + $0x10] sm:$0xff]  ;;  %s1147_s18 = sshll.u32 %s427_s15, 4  ;;  %s1135_s23 = scalar_lea.sflag [#allocation4], %s1835_s26  ;;  %s1148_s18 = int_to_ptr.vmem [resolvable:$true] %s1147_s18 }
  0x54   : > { %533 = vmatpush.msra.mxu0 %v474_v46  ;;  %553 = vmatpush.msra.mxu1 %v475_v47  ;;  %v1886_v21 = vld [vmem:[%s1839_s17] sm:$0xff]  ;;  %v1897_v29 = vld [vmem:[%s1839_s17 + $0x8] sm:$0xff]  ;;  %v1905_v31 = vld [vmem:[%s1839_s17 + $0x18] sm:$0xff]  ;;  %s1671_s17 = smov 96  }
  0x55   : > { %573 = vmatpush.msra.mxu2 %v476_v48  ;;  %593 = vmatpush.msra.mxu3 %v477_v49  ;;  %v1914_v33 = vld [vmem:[%s439_s11] sm:$0xff]  ;;  %v709_v35 = vld [vmem:[#allocation8 + $0x58] sm:$0xff]  ;;  %v708_v36 = vld [vmem:[#allocation8 + $0x50] sm:$0xff] }
  0x56   : > { %534 = vmatpush.msra.mxu0 %v470_v50  ;;  %554 = vmatpush.msra.mxu1 %v471_v51  ;;  %v710_v34 = vld [vmem:[#allocation8 + $0x60] sm:$0xff]  ;;  %v707_v37 = vld [vmem:[#allocation8 + $0x48] sm:$0xff]  ;;  %v705_v39 = vld [vmem:[#allocation8 + $0x38] sm:$0xff] }
  0x57   : > { %574 = vmatpush.msra.mxu2 %v472_v52  ;;  %594 = vmatpush.msra.mxu3 %v473_v53  ;;  %v706_v38 = vld [vmem:[#allocation8 + $0x40] sm:$0xff]  ;;  %v704_v40 = vld [vmem:[#allocation8 + $0x30] sm:$0xff]  ;;  %v703_v41 = vld [vmem:[#allocation8 + $0x28] sm:$0xff] }
  0x58   : > { %535 = vmatpush.msra.mxu0 %v466_v54  ;;  %555 = vmatpush.msra.mxu1 %v467_v55  ;;  %v702_v42 = vld [vmem:[#allocation8 + $0x20] sm:$0xff]  ;;  %v701_v43 = vld [vmem:[#allocation8 + $0x18] sm:$0xff]  ;;  %v700_v46 = vld [vmem:[#allocation8 + $0x10] sm:$0xff] }
  0x59   : > { %575 = vmatpush.msra.mxu2 %v468_v56  ;;  %595 = vmatpush.msra.mxu3 %v469_v57  ;;  %v795_v44 = vld [vmem:[#allocation7 + $0x78] sm:$0xff]  ;;  %v854_v47 = vld [vmem:[#allocation7 + $0xf0] sm:$0xff]  ;;  %v699_v50 = vld [vmem:[#allocation8 + $0x8] sm:$0xff] }
  0x5a   : > { %536 = vmatpush.msra.mxu0 %v462_v58  ;;  %556 = vmatpush.msra.mxu1 %v463_v59  ;;  %v915_v45 = vld [vmem:[#allocation7 + $0x178] sm:$0xff]  ;;  %v794_v48 = vld [vmem:[#allocation7 + $0x70] sm:$0xff]  ;;  %v853_v51 = vld [vmem:[#allocation7 + $0xe8] sm:$0xff] }
  0x5b   : > { %576 = vmatpush.msra.mxu2 %v464_v60  ;;  %596 = vmatpush.msra.mxu3 %v465_v61  ;;  %v914_v49 = vld [vmem:[#allocation7 + $0x170] sm:$0xff]  ;;  %v793_v52 = vld [vmem:[#allocation7 + $0x68] sm:$0xff]  ;;  %v698_v54 = vld [vmem:[#allocation8] sm:$0xff] }
  0x5c   : > { %537 = vmatpush.msra.mxu0 %v458_v62  ;;  %557 = vmatpush.msra.mxu1 %v459_v63  ;;  %v913_v53 = vld [vmem:[#allocation7 + $0x168] sm:$0xff]  ;;  %v792_v58 = vld [vmem:[#allocation7 + $0x60] sm:$0xff]  ;;  %v975_v61 = vld [vmem:[#allocation7 + $0x1f8] sm:$0xff] }
  0x5d   : > { %577 = vmatpush.msra.mxu2 %v460_v1  ;;  %597 = vmatpush.msra.mxu3 %v461_v2  ;;  %v852_v59 = vld [vmem:[#allocation7 + $0xe0] sm:$0xff]  ;;  %v791_v62 = vld [vmem:[#allocation7 + $0x58] sm:$0xff] }
  0x5e   : > { %1430 = vset.pattern.permute.xlu1 %v1655_v4  ;;  %1432 = vset.pattern.permute.xlu2 %v1658_v10  ;;  %v912_v60 = vld [vmem:[#allocation7 + $0x160] sm:$0xff]  ;;  %v851_v63 = vld [vmem:[#allocation7 + $0xd8] sm:$0xff]  ;;  %v850_v4 = vld [vmem:[#allocation7 + $0xd0] sm:$0xff] }
  0x5f   : > { %882 = vperm.xlu1 %1430, %v1866_v3   ;;  %822 = vperm.xlu2 %1432, %v1866_v3   ;;  %v911_v2 = vld [vmem:[#allocation7 + $0x158] sm:$0xff]  ;;  %v909_v10 = vld [vmem:[#allocation7 + $0x148] sm:$0xff] }
  0x60   : > { %1429 = vset.pattern.permute.xlu0 %v1660_v12  ;;  %714 = vmatpush.msrb.mxu0 %v713_v18  ;;  %v788_v12 = vld [vmem:[#allocation7 + $0x40] sm:$0xff]  ;;  %v847_v18 = vld [vmem:[#allocation7 + $0xb8] sm:$0xff] }
  0x61   : > { %877 = vperm.xlu0 %1429, %v1866_v3  }
  0x62   : > { %715 = vmatpush.msrb.mxu0 %v712_v19  ;;  %v907_v19 = vld [vmem:[#allocation7 + $0x138] sm:$0xff] }
  0x64   : > { %716 = vmatpush.msrb.mxu0 %v711_v20  ;;  %v970_v20 = vld [vmem:[#allocation7 + $0x1d0] sm:$0xff] }
  0x66   : > { %717 = vmatpush.msrb.mxu0 %v710_v34  ;;  %v968_v34 = vld [vmem:[#allocation7 + $0x1c0] sm:$0xff] }
  0x67   : > { %1431 = vset.pattern.permute.xlu1 %v1656_v5  ;;  %1433 = vset.pattern.permute.xlu2 %v1661_v13  ;;  %v790_v5 = vld [vmem:[#allocation7 + $0x50] sm:$0xff]  ;;  %v848_v13 = vld [vmem:[#allocation7 + $0xc0] sm:$0xff] }
  0x68   : > { %817 = vperm.xlu1 %1431, %v1866_v3   ;;  %888 = vperm.xlu2 %1433, %v1866_v3  }
  0x69   : > { %1436 = vset.pattern.permute.xlu0 %v1662_v14  ;;  %718 = vmatpush.msrb.mxu0 %v709_v35  ;;  %v908_v14 = vld [vmem:[#allocation7 + $0x140] sm:$0xff] }
  0x6a   : > { %834 = vperm.xlu0 %1436, %v1866_v3   ;;  %v784_v35 = vld [vmem:[#allocation7 + $0x20] sm:$0xff] }
  0x6b   : > { %719 = vmatpush.msrb.mxu0 %v708_v36  ;;  %v844_v36 = vld [vmem:[#allocation7 + $0xa0] sm:$0xff] }
  0x6d   : > { %720 = vmatpush.msrb.mxu0 %v707_v37  ;;  %v904_v37 = vld [vmem:[#allocation7 + $0x120] sm:$0xff] }
  0x6f   : > { %721 = vmatpush.msrb.mxu0 %v706_v38  ;;  %v967_v38 = vld [vmem:[#allocation7 + $0x1b8] sm:$0xff] }
  0x70   : > { %1434 = vset.pattern.permute.xlu1 %v1657_v6  ;;  %1435 = vset.pattern.permute.xlu2 %v1663_v15  ;;  %v910_v6 = vld [vmem:[#allocation7 + $0x150] sm:$0xff]  ;;  %v971_v15 = vld [vmem:[#allocation7 + $0x1d8] sm:$0xff] }
  0x71   : > { %828 = vperm.xlu1 %1434, %v1866_v3   ;;  %894 = vperm.xlu2 %1435, %v1866_v3  }
  0x72   : > { %1441 = vset.pattern.permute.xlu0 %v1665_v17  ;;  %722 = vmatpush.msrb.mxu0 %v705_v39  ;;  %v787_v17 = vld [vmem:[#allocation7 + $0x38] sm:$0xff] }
  0x73   : > { %948 = vperm.xlu0 %1441, %v1866_v3   ;;  %v783_v39 = vld [vmem:[#allocation7 + $0x18] sm:$0xff] }
  0x74   : > { %723 = vmatpush.msrb.mxu0 %v704_v40  ;;  %v843_v40 = vld [vmem:[#allocation7 + $0x98] sm:$0xff] }
  0x76   : > { %724 = vmatpush.msrb.mxu0 %v703_v41  ;;  %v903_v41 = vld [vmem:[#allocation7 + $0x118] sm:$0xff] }
  0x78   : > { %725 = vmatpush.msrb.mxu0 %v702_v42  ;;  %v966_v42 = vld [vmem:[#allocation7 + $0x1b0] sm:$0xff] }
  0x79   : > { %1437 = vset.pattern.permute.xlu1 %v1659_v11  ;;  %1438 = vset.pattern.permute.xlu2 %v1666_v22  ;;  %v972_v11 = vld [vmem:[#allocation7 + $0x1e0] sm:$0xff]  ;;  %v846_v22 = vld [vmem:[#allocation7 + $0xb0] sm:$0xff] }
  0x7a   : > { %937 = vperm.xlu1 %1437, %v1866_v3   ;;  %942 = vperm.xlu2 %1438, %v1866_v3  }
  0x7b   : > { %1446 = vset.pattern.permute.xlu0 %v1654_v0  ;;  %726 = vmatpush.msrb.mxu0 %v701_v43  ;;  %v842_v43 = vld [vmem:[#allocation7 + $0x90] sm:$0xff] }
  0x7d   : > { %727 = vmatpush.msrb.mxu0 %v700_v46  ;;  %v965_v46 = vld [vmem:[#allocation7 + $0x1a8] sm:$0xff] }
  0x7f   : > { %728 = vmatpush.msrb.mxu0 %v699_v50  ;;  %v901_v50 = vld [vmem:[#allocation7 + $0x108] sm:$0xff] }
  0x81   : > { %729 = vmatpush.msrb.mxu0 %v698_v54  ;;  %v900_v54 = vld [vmem:[#allocation7 + $0x100] sm:$0xff] }
  0x82   : > { %1439 = vset.pattern.permute.xlu1 %v1654_v0  ;;  %1440 = vset.pattern.permute.xlu2 %v1668_v30  ;;  %v785_v30 = vld [vmem:[#allocation7 + $0x28] sm:$0xff] }
  0x83   : > { %758 = vperm.xlu1 %1439, %v1866_v3   ;;  %763 = vperm.xlu2 %1440, %v1866_v3  }
  0x8b   : > { %1442 = vset.pattern.permute.xlu1 %v1664_v16  ;;  %1443 = vset.pattern.permute.xlu2 %v1669_v32  ;;  %v905_v32 = vld [vmem:[#allocation7 + $0x128] sm:$0xff] }
  0x8c   : > { %769 = vperm.xlu1 %1442, %v1866_v3   ;;  %954 = vperm.xlu2 %1443, %v1866_v3  }
  0x94   : > { %1444 = vset.pattern.permute.xlu1 %v1667_v23  ;;  %735 = vrot.lane.b32.xlu2 %v1914_v33, %s1670_s10  ;;  %s1591_s10 = scalar_lea.hbm %s1997_s8, 16 }
  0x95   : > { %775 = vperm.xlu1 %1444, %v1866_v3   ;;  %1445 = vset.pattern.permute.xlu2 %v1654_v0  ;;  %v855_v0 = vld [vmem:[#allocation7 + $0xf8] sm:$0xff]  ;;  %v974_v3 = vld [vmem:[#allocation7 + $0x1f0] sm:$0xff]  ;;  %p1593_p2 = scmp.lt.s32.totalorder %s1591_s10, %s1587_s5 }
  0x96   : > { %856 = vmatpush.msrb.mxu2 %v855_v0  ;;  %v782_v0 = vld [vmem:[#allocation7 + $0x10] sm:$0xff] }
  0x97   : > { %p1594_p10 = por %p1593_p2, %p1592_p9 }
  0x98   : > { %857 = vmatpush.msrb.mxu2 %v854_v47  ;;  %v841_v47 = vld [vmem:[#allocation7 + $0x88] sm:$0xff] }
  0x99   : > { %p1595_p12 = pnand %p1594_p10, %p1590_p11 }
  0x9a   : > { %858 = vmatpush.msrb.mxu2 %v853_v51  ;;  %v964_v51 = vld [vmem:[#allocation7 + $0x1a0] sm:$0xff] }
  0x9c   : > { %859 = vmatpush.msrb.mxu2 %v852_v59  ;;  %v962_v59 = vld [vmem:[#allocation7 + $0x190] sm:$0xff] }
  0x9e   : > { %860 = vmatpush.msrb.mxu2 %v851_v63 }
  0xa0   : > { %861 = vmatpush.msrb.mxu2 %v850_v4 }
  0xb5   : > { %v450_v8 = vpop.permute.xlu0 %449 }
  0xb6   : > { %v452_v9 = vmul.f32 %v450_v8, %v446_v7  ;;  %v973_v7 = vld [vmem:[#allocation7 + $0x1e8] sm:$0xff] }
  0xb7   : > { %v849_v8 = vld [vmem:[#allocation7 + $0xc8] sm:$0xff] }
  0xb8   : > { %538 = vmatmul.f32.vlgmr.msra.gmra.mxu0 %v452_v9  ;;  %558 = vmatmul.f32.vlgmr.msra.gmra.mxu1 %v452_v9 }
  0xb9   : > { %578 = vmatmul.f32.vlgmr.msra.gmra.mxu2 %v452_v9  ;;  %598 = vmatmul.f32.vlgmr.msra.gmra.mxu3 %v452_v9  ;;  %v1920_v56 = vpop.permute.xlu2 %822  ;;  %v789_v9 = vld [vmem:[#allocation7 + $0x48] sm:$0xff] }
  0xba   : > { %976 = vmatpush.msra.mxu0 %v975_v61  ;;  %862 = vmatpush.msrb.mxu2 %v849_v8 }
  0xbc   : > { %977 = vmatpush.msra.mxu0 %v974_v3  ;;  %863 = vmatpush.msrb.mxu2 %v848_v13 }
  0xbe   : > { %978 = vmatpush.msra.mxu0 %v973_v7  ;;  %864 = vmatpush.msrb.mxu2 %v847_v18 }
  0xc0   : > { %979 = vmatpush.msra.mxu0 %v972_v11  ;;  %865 = vmatpush.msrb.mxu2 %v846_v22 }
  0xc2   : > { %v1924_v1 = vpop.permute.xlu2 %888  ;;  %980 = vmatpush.msra.mxu0 %v971_v15 }
  0xc4   : > { %981 = vmatpush.msra.mxu0 %v970_v20 }
  0xcb   : > { %v1928_v23 = vpop.permute.xlu2 %894 }
  0xd1   : > { %v1918_v55 = vpop.permute.xlu1 %882 }
  0xd3   : > { %v878_v63 = vpop.permute.xlu0 %877 }
  0xda   : > { %v1922_v57 = vpop.permute.xlu1 %817 }
  0xe3   : > { %v1926_v16 = vpop.permute.xlu1 %828 }
 0x135   : > { %v539_v24 = vpop.f32.mrf.mxu0  ;;  %v559_v25 = vpop.f32.mrf.mxu1 }
 0x136   : > { %621 = vmatpush.msrb.mxu1 %v539_v24  ;;  %v786_v24 = vld [vmem:[#allocation7 + $0x30] sm:$0xff] }
 0x137   : > { %1316 = vmatmul.msk.f32.vlgmr.msrb.gmra.mxu1 %vm602_vm0, %v1886_v21 }
 0x138   : > { %644 = vmatpush.msra.mxu1 %v559_v25  ;;  %v906_v25 = vld [vmem:[#allocation7 + $0x130] sm:$0xff] }
 0x13a   : > { %796 = vmatpush.msrb.mxu1 %v795_v44  ;;  %v938_v44 = vpop.permute.xlu1 %937 }
 0x13c   : > { %v579_v27 = vpop.f32.mrf.mxu2  ;;  %v599_v28 = vpop.f32.mrf.mxu3  ;;  %797 = vmatpush.msrb.mxu1 %v794_v48 }
 0x13d   : > { %667 = vmatpush.msrb.mxu3 %v579_v27  ;;  %v969_v27 = vld [vmem:[#allocation7 + $0x1c8] sm:$0xff]  ;;  %v943_v48 = vpop.permute.xlu2 %942 }
 0x13e   : > { %1318 = vmatmul.msk.f32.vlgmr.msrb.gmra.mxu3 %vm602_vm0, %v1894_v26  ;;  %798 = vmatpush.msrb.mxu1 %v793_v52  ;;  %v780_v52 = vld [vmem:[#allocation7] sm:$0xff] }
 0x13f   : > { %690 = vmatpush.msra.mxu3 %v599_v28  ;;  %1317 = vmatmul.msk.f32.vlgmr.msra.gmra.mxu1 %vm602_vm0, %v1897_v29  ;;  %v845_v28 = vld [vmem:[#allocation7 + $0xa8] sm:$0xff] }
 0x140   : > { %799 = vmatpush.msrb.mxu1 %v792_v58  ;;  %982 = vmatpush.msra.mxu0 %v969_v27  ;;  %v963_v58 = vld [vmem:[#allocation7 + $0x198] sm:$0xff] }
 0x141   : > { %916 = vmatpush.msrb.mxu3 %v915_v45  ;;  %866 = vmatpush.msrb.mxu2 %v845_v28  ;;  %v902_v45 = vld [vmem:[#allocation7 + $0x110] sm:$0xff] }
 0x142   : > { %800 = vmatpush.msrb.mxu1 %v791_v62  ;;  %983 = vmatpush.msra.mxu0 %v968_v34  ;;  %v759_v61 = vpop.permute.xlu1 %758  ;;  %v960_v62 = vld [vmem:[#allocation7 + $0x180] sm:$0xff] }
 0x143   : > { %917 = vmatpush.msrb.mxu3 %v914_v49  ;;  %867 = vmatpush.msrb.mxu2 %v844_v36  ;;  %v781_v49 = vld [vmem:[#allocation7 + $0x8] sm:$0xff] }
 0x144   : > { %801 = vmatpush.msrb.mxu1 %v790_v5  ;;  %984 = vmatpush.msra.mxu0 %v967_v38  ;;  %v835_v5 = vpop.permute.xlu0 %834 }
 0x145   : > { %918 = vmatpush.msrb.mxu3 %v913_v53  ;;  %868 = vmatpush.msrb.mxu2 %v843_v40  ;;  %v840_v53 = vld [vmem:[#allocation7 + $0x80] sm:$0xff] }
 0x146   : > { %1319 = vmatmul.msk.f32.vlgmr.msra.gmra.mxu3 %vm602_vm0, %v1905_v31  ;;  %802 = vmatpush.msrb.mxu1 %v789_v9 }
 0x147   : > { %919 = vmatpush.msrb.mxu3 %v912_v60  ;;  %985 = vmatpush.msra.mxu0 %v966_v42  ;;  %v961_v60 = vld [vmem:[#allocation7 + $0x188] sm:$0xff] }
 0x148   : > { %803 = vmatpush.msrb.mxu1 %v788_v12  ;;  %869 = vmatpush.msrb.mxu2 %v842_v43 }
 0x149   : > { %920 = vmatpush.msrb.mxu3 %v911_v2  ;;  %986 = vmatpush.msra.mxu0 %v965_v46  ;;  %v764_v2 = vpop.permute.xlu2 %763 }
 0x14a   : > { %804 = vmatpush.msrb.mxu1 %v787_v17  ;;  %870 = vmatpush.msrb.mxu2 %v841_v47  ;;  %v770_v4 = vpop.permute.xlu1 %769 }
 0x14b   : > { %921 = vmatpush.msrb.mxu3 %v910_v6  ;;  %987 = vmatpush.msra.mxu0 %v964_v51 }
 0x14c   : > { %805 = vmatpush.msrb.mxu1 %v786_v24  ;;  %871 = vmatpush.msrb.mxu2 %v840_v53 }
 0x14d   : > { %922 = vmatpush.msrb.mxu3 %v909_v10  ;;  %988 = vmatpush.msra.mxu0 %v963_v58 }
 0x14e   : > { %806 = vmatpush.msrb.mxu1 %v785_v30 }
 0x14f   : > { %923 = vmatpush.msrb.mxu3 %v908_v14  ;;  %989 = vmatpush.msra.mxu0 %v962_v59 }
 0x150   : > { %807 = vmatpush.msrb.mxu1 %v784_v35 }
 0x151   : > { %924 = vmatpush.msrb.mxu3 %v907_v19  ;;  %990 = vmatpush.msra.mxu0 %v961_v60  ;;  %v955_v6 = vpop.permute.xlu2 %954  ;;  %v1094_v60 = vld [vmem:[#allocation8 + $0xf8] sm:$0xff] }
 0x152   : > { %808 = vmatpush.msrb.mxu1 %v783_v39  ;;  %v776_v20 = vpop.permute.xlu1 %775  ;;  %1095 = vmatpush.msra.mxu2 %v1094_v60 }
 0x153   : > { %925 = vmatpush.msrb.mxu3 %v906_v25  ;;  %991 = vmatpush.msra.mxu0 %v960_v62  ;;  %v949_v25 = vpop.permute.xlu0 %948  ;;  %v1092_v62 = vld [vmem:[#allocation8 + $0xe8] sm:$0xff] }
 0x154   : > { %809 = vmatpush.msrb.mxu1 %v782_v0 }
 0x155   : > { %926 = vmatpush.msrb.mxu3 %v905_v32 }
 0x156   : > { %810 = vmatpush.msrb.mxu1 %v781_v49 }
 0x157   : > { %927 = vmatpush.msrb.mxu3 %v904_v37 }
 0x158   : > { %811 = vmatpush.msrb.mxu1 %v780_v52 }
 0x159   : > { %928 = vmatpush.msrb.mxu3 %v903_v41  ;;  %v1935_v34 = vpop.permute.xlu2 %735 }
 0x15b   : > { %929 = vmatpush.msrb.mxu3 %v902_v45 }
 0x15d   : > { %930 = vmatpush.msrb.mxu3 %v901_v50 }
 0x15f   : > { %931 = vmatpush.msrb.mxu3 %v900_v54 }
 0x1b4   : > { %v623_v3 = vpop.f32.mrf.mxu1 }
 0x1b5   : > { %v761_v9 = vmul.f32 %v759_v61, %v623_v3  ;;  %v880_v11 = vmul.f32 %v878_v63, %v623_v3  ;;  %v820_v18 = vmul.f32 %v1922_v57, %v623_v3  ;;  %v940_v28 = vmul.f32 %v938_v44, %v623_v3  ;;  %v1093_v61 = vld [vmem:[#allocation8 + $0xf0] sm:$0xff]  ;;  %v1091_v63 = vld [vmem:[#allocation8 + $0xe0] sm:$0xff] }
 0x1b6   : > { %1096 = vmatpush.msra.mxu2 %v1093_v61 }
 0x1b8   : > { %1097 = vmatpush.msra.mxu2 %v1092_v62 }
 0x1ba   : > { %1098 = vmatpush.msra.mxu2 %v1091_v63 }
 0x1bc   : > { %v646_v7 = vpop.f32.mrf.mxu1 }
 0x1bd   : > { %v766_v10 = vmul.f32 %v764_v2, %v646_v7  ;;  %v885_v12 = vmul.f32 %v1918_v55, %v646_v7  ;;  %v825_v13 = vmul.f32 %v1920_v56, %v646_v7  ;;  %v695_v17 = vadd.f32 %v646_v7, %v623_v3  ;;  %v1090_v2 = vld [vmem:[#allocation8 + $0xd8] sm:$0xff]  ;;  %v1088_v3 = vld [vmem:[#allocation8 + $0xc8] sm:$0xff] }
 0x1be   : > { %v945_v30 = vmul.f32 %v943_v48, %v646_v7  ;;  %1099 = vmatpush.msra.mxu2 %v1090_v2  ;;  %v1081_v7 = vld [vmem:[#allocation8 + $0x90] sm:$0xff] }
 0x1bf   : > { %v767_v19 = vadd.f32 %v766_v10, %v761_v9  ;;  %v886_v24 = vadd.f32 %v885_v12, %v880_v11  ;;  %v826_v56 = vadd.f32 %v825_v13, %v820_v18  ;;  %v1079_v9 = vld [vmem:[#allocation8 + $0x80] sm:$0xff] }
 0x1c0   : > { %v946_v43 = vadd.f32 %v945_v30, %v940_v28 }
 0x1c1   : > { %v669_v8 = vpop.f32.mrf.mxu3 }
 0x1c2   : > { %v772_v14 = vmul.f32 %v770_v4, %v669_v8  ;;  %v891_v15 = vmul.f32 %v1924_v1, %v669_v8  ;;  %v831_v22 = vmul.f32 %v1926_v16, %v669_v8  ;;  %v696_v27 = vadd.f32 %v695_v17, %v669_v8  ;;  %v1085_v4 = vld [vmem:[#allocation8 + $0xb0] sm:$0xff] }
 0x1c3   : > { %v951_v39 = vmul.f32 %v949_v25, %v669_v8  ;;  %v1080_v8 = vld [vmem:[#allocation8 + $0x88] sm:$0xff] }
 0x1c4   : > { %v773_v55 = vadd.f32 %v772_v14, %v767_v19  ;;  %v892_v37 = vadd.f32 %v891_v15, %v886_v24  ;;  %v832_v57 = vadd.f32 %v831_v22, %v826_v56 }
 0x1c5   : > { %v952_v45 = vadd.f32 %v951_v39, %v946_v43 }
 0x1c9   : > { %v692_v32 = vpop.f32.mrf.mxu3 }
 0x1ca   : > { %v778_v35 = vmul.f32 %v776_v20, %v692_v32  ;;  %v897_v1 = vmul.f32 %v1928_v23, %v692_v32  ;;  %v697_v36 = vadd.f32 %v696_v27, %v692_v32  ;;  %v837_v38 = vmul.f32 %v835_v5, %v692_v32  ;;  %v1083_v5 = vld [vmem:[#allocation8 + $0xa0] sm:$0xff] }
 0x1cb   : > { %v957_v44 = vmul.f32 %v955_v6, %v692_v32  ;;  %v1082_v6 = vld [vmem:[#allocation8 + $0x98] sm:$0xff] }
 0x1cc   : > { %v738_v16 = vmul.f32 %v1935_v34, %v697_v36  ;;  %730 = vmatmul.f32.vlgmr.msrb.gmra.mxu0 %v697_v36  ;;  %v779_v40 = vadd.f32 %v778_v35, %v773_v55  ;;  %v898_v41 = vadd.f32 %v897_v1, %v892_v37  ;;  %v838_v42 = vadd.f32 %v837_v38, %v832_v57 }
 0x1cd   : > { %v958_v23 = vadd.f32 %v957_v44, %v952_v45 }
 0x1ce   : > { %v739_v0 = vadd.f32 1e-20, %v738_v16  ;;  %812 = vmatmul.f32.vlgmr.msrb.gmra.mxu1 %v779_v40  ;;  %932 = vmatmul.f32.vlgmr.msrb.gmra.mxu3 %v898_v41 }
 0x1cf   : > { %872 = vmatmul.f32.vlgmr.msrb.gmra.mxu2 %v838_v42 }
 0x1d0   : > { %1447 = vrcp.f32 %v739_v0 }
 0x1d4   : > { %992 = vmatmul.f32.vlgmr.msra.gmra.mxu0 %v958_v23 }
 0x1d6   : > { %v1448_v46 = vpop.eup %1447 }
 0x1d7   : > { %v741_v47 = vmul.f32 %v1448_v46, %v739_v0 }
 0x1d9   : > { %v742_v48 = vsub.f32 2.0, %v741_v47 }
 0x1db   : > { %v743_v49 = vmul.f32 %v1448_v46, %v742_v48 }
 0x1dd   : > { %745 = vrot.lane.b32.xlu0 %v743_v49, %s1671_s17 }
 0x249   : > { %v1940_v50 = vpop.f32.mrf.mxu0 }
 0x24b   : > { %v813_v59 = vpop.f32.mrf.mxu1 }
 0x24f   : > { %v746_v51 = vpop.permute.xlu0 %745 }
 0x250   : > { %v748_v52 = vmul.f32 %v746_v51, %v1914_v33 }
 0x251   : > { %v933_v53 = vpop.f32.mrf.mxu3  ;;  %v993_v54 = vpop.f32.mrf.mxu0 }
 0x252   : > { %v873_v58 = vpop.f32.mrf.mxu2  ;;  %1031 = vmatpush.msra.mxu3 %v933_v53  ;;  %751 = vperm.xlu2 %1445, %v748_v52  }
 0x253   : > { %1011 = vmatpush.msra.mxu1 %v873_v58  ;;  %1321 = vmatmul.msk.f32.vlgmr.msra.gmra.mxu3 %vm602_vm0, %v1894_v26  ;;  %v1089_v26 = vld [vmem:[#allocation8 + $0xd0] sm:$0xff] }
 0x254   : > { %1051 = vmatpush.msrb.mxu3 %v993_v54  ;;  %1320 = vmatmul.msk.f32.vlgmr.msra.gmra.mxu1 %vm602_vm0, %v1897_v29  ;;  %v1087_v29 = vld [vmem:[#allocation8 + $0xc0] sm:$0xff] }
 0x255   : > { %1071 = vmatpush.msrb.mxu1 %v813_v59  ;;  %1100 = vmatpush.msra.mxu2 %v1089_v26 }
 0x257   : > { %1101 = vmatpush.msra.mxu2 %v1088_v3 }
 0x259   : > { %1102 = vmatpush.msra.mxu2 %v1087_v29 }
 0x25b   : > { %1322 = vmatmul.msk.f32.vlgmr.msrb.gmra.mxu3 %vm602_vm0, %v1905_v31  ;;  %v1086_v31 = vld [vmem:[#allocation8 + $0xb8] sm:$0xff] }
 0x25c   : > { %1323 = vmatmul.msk.f32.vlgmr.msrb.gmra.mxu1 %vm602_vm0, %v1886_v21  ;;  %1103 = vmatpush.msra.mxu2 %v1086_v31  ;;  %v1084_v21 = vld [vmem:[#allocation8 + $0xa8] sm:$0xff] }
 0x25e   : > { %1104 = vmatpush.msra.mxu2 %v1085_v4 }
 0x260   : > { %1105 = vmatpush.msra.mxu2 %v1084_v21 }
 0x262   : > { %1106 = vmatpush.msra.mxu2 %v1083_v5 }
 0x264   : > { %1107 = vmatpush.msra.mxu2 %v1082_v6 }
 0x266   : > { %1108 = vmatpush.msra.mxu2 %v1081_v7 }
 0x268   : > { %1109 = vmatpush.msra.mxu2 %v1080_v8 }
 0x26a   : > { %1110 = vmatpush.msra.mxu2 %v1079_v9 }
 0x2ac   : > { %v752_v30 = vpop.permute.xlu2 %751 }
 0x2ad   : > { %v754_v55 = vmul.f32 %v752_v30, %v1940_v50 }
 0x2d1   : > { %v1013_v10 = vpop.f32.mrf.mxu1 }
 0x2d6   : > { %v1033_v11 = vpop.f32.mrf.mxu3 }
 0x2d9   : > { %v1073_v12 = vpop.f32.mrf.mxu1 }
 0x2da   : > { %v1074_v13 = vadd.f32 %v1073_v12, %v1013_v10 }
 0x2dc   : > { %v1076_v14 = vadd.f32 %v1074_v13, %v1033_v11 }
 0x2de   : > { %v1053_v15 = vpop.f32.mrf.mxu3 }
 0x2df   : > { %v1077_v17 = vadd.f32 %v1076_v14, %v1053_v15 }
 0x2e1   : > { %v1115_v18 = vmul.f32 %v1077_v17, %v1935_v34  ;;  %1111 = vmatmul.f32.vlgmr.msra.gmra.mxu2 %v1077_v17 }
 0x2e3   : > { %v1116_v19 = vadd.f32 1e-20, %v1115_v18 }
 0x2e5   : > { %1449 = vrcp.f32 %v1116_v19 }
 0x2eb   : > { %v1450_v20 = vpop.eup %1449 }
 0x2ec   : > { %v1118_v22 = vmul.f32 %v1450_v20, %v1116_v19 }
 0x2ee   : > { %v1119_v24 = vsub.f32 2.0, %v1118_v22 }
 0x2f0   : > { %v1120_v25 = vmul.f32 %v1450_v20, %v1119_v24 }
 0x2f2   : > { %1122 = vrot.lane.b32.xlu1 %v1120_v25, %s1671_s17 }
 0x364   : > { %v1123_v27 = vpop.permute.xlu1 %1122  ;;  %v1112_v32 = vpop.f32.mrf.mxu2 }
 0x365   : > { %v1125_v28 = vmul.f32 %v1123_v27, %v1914_v33 }
 0x367   : > { %1128 = vperm.xlu0 %1446, %v1125_v28  }
 0x3d9   : > { %v1129_v34 = vpop.permute.xlu0 %1128 }
 0x3da   : > { %v1131_v56 = vmul.f32 %v1129_v34, %v1112_v32 }
 0x3dc   : > { %v1132_v35 = vadd.f32 %v1131_v56, %v754_v55 }
 0x3de   : > { %1133 = vst [vmem:[%s427_s15] sm:$0xff] %v1132_v35 }
 0x3df   : > { %1598 = shalt.err (!%p1595_p12)
}
 0x3e0   : > { %1343 = dma.vmem_to_hbm [thread:$0]  (%p1805_p3), %s1148_s18, 128, %s1150_s19, %s1135_s23  }
 0x3e1 PF: > { %s1161_s26 = sand.u32 1, %s1633_s27   ;;  %p2012_p13 = scmp.ge.s32.totalorder %s1645_s30, 2 }
 0x3e2   : > { %s1162_s13 = scalar_lea.sflag [#allocation4], %s1161_s26 }
 0x3e3   : > { %p1360_p0 = pnand %p2012_p13, %p1752_p6 }
 0x3e5   : > { %p1361_p5 = pneg %p1360_p0 }
 0x3e7   : > { %1628 = dma.done.wait (%p1361_p5), %s1162_s13, 128  }
 0x3e8   : > { %1630 = vsyncadd (%p1361_p5), %s1162_s13, 4294967168  ;;  %p23_p7 = scmp.ge.s32.totalorder %s1792_s21, 4   ;;  %s2013_s27 = smov %s1637_s28 }
 0x3e9   : > { %s2014_s28 = smov %s1641_s29  ;;  %s2015_s29 = smov %s1801_s24 }
 0x3ea   : > { %s2016_s30 = smov %s1792_s21  ;;  %25 = sbr.rel (!%p23_p7) target bundleno = 10 (0xa), region = 125 }
 0x3ef   :  { %1168 = vsyncpa [#allocation3], 1 }
 0x3f0   :  { %1170 = vsyncpa [#allocation3 + $0x1], 1 }
 0x3f1   :  { %1171 = vsyncpa [#allocation6], 1 }
 0x3f2   :  { %1172 = vsyncpa [#allocation9], 1 }
 0x3f3   :  { %1173 = vsyncpa [#allocation4], 1 }
 0x3f4   :  { %1175 = vsyncpa [#allocation4 + $0x1], 1 }

</bundles_post_ra>
